<compile_context>
chip_gen: v7x
topology: tpu7x:2x2x1
jax: 0.10.0
libtpu: 0.0.40
codegen_flags: <defaults>
</compile_context>

<pallas_src>
import functools

import jax
import jax.numpy as jnp
from jax import lax
from jax.experimental import pallas as pl
from jax.experimental.pallas import tpu as pltpu


def resblock_kernel(x_ref, cmask_ref, w1_ref, b1_ref, w2_ref, b2_ref, o_ref,
                    pad_ref, *, W):
    # x_ref    : (1, Cin, H*W)  one batch element, NCHW-flattened (lane-dense)
    # cmask_ref: (2, H*W)       0/1 column masks (row 0: dx=-1, row 1: dx=+1)
    # w1_ref   : (9, Nh, Cin)   conv1 weights, one (Nh, Cin) matrix per tap
    # b1_ref   : (Nh, 1)
    # w2_ref   : (9, Cin, Nh)   conv2 weights, one (Cin, Nh) matrix per tap
    # b2_ref   : (Cin, 1)
    # o_ref    : (1, Cin, H*W)
    # pad_ref  : (Cin, H*W + 2*(W+1)) VMEM scratch (flat zero-padded activation)
    _, Cin, HW = x_ref.shape
    Nh = w1_ref.shape[1]
    PAD = W + 1

    x = x_ref[0].astype(jnp.float32)                        # (Cin, HW)

    # Flat zero pad of width W+1 on each side absorbs every row offset
    # (dy in {-1,0,+1} == -+W in the flattened index); dx=+-1 taps that fall
    # off the left/right image edge are killed by the 0/1 column masks.
    pad_ref[...] = jnp.zeros(pad_ref.shape, jnp.float32)
    pad_ref[:, PAD:PAD + HW] = x

    def window(oy, ox):
        # window(oy, ox)[:, y*W + x] == padded_source[:, (y+oy)*W + (x+ox)]
        start = PAD + oy * W + ox                           # static, in [0, 2W+2]
        v = pad_ref[:, start:start + HW]                    # (Cin, HW)
        if ox == -1:
            v = v * cmask_ref[0:1, :]
        elif ox == 1:
            v = v * cmask_ref[1:2, :]
        return v

    # ---- conv1 (3x3, stride 1, pad 1) + bias + ReLU ----
    acc1 = jnp.zeros((Nh, HW), jnp.float32)
    for dy in range(3):
        for dx in range(3):
            acc1 = acc1 + jnp.dot(w1_ref[dy * 3 + dx], window(dy - 1, dx - 1),
                                  preferred_element_type=jnp.float32)
    h = jnp.maximum(acc1 + b1_ref[...], 0.0)                # (Nh, HW), lane-dense

    # ---- conv2 (3x3, stride 1, pad 1) + bias ----
    # Shift the small (Cin, HW) per-tap product instead of the big (Nh, HW)
    # hidden activation:  out[:, p] = sum_taps (w2_tap @ h)[:, p + s_tap] masked.
    acc2 = jnp.zeros((Cin, HW), jnp.float32)
    for dy in range(3):
        for dx in range(3):
            t = jnp.dot(w2_ref[dy * 3 + dx], h,
                        preferred_element_type=jnp.float32)  # (Cin, HW)
            pad_ref[:, PAD:PAD + HW] = t                     # pad strips stay 0
            acc2 = acc2 + window(dy - 1, dx - 1)
    y = acc2 + b2_ref[...]

    # ---- residual add (x already loaded), lane-dense (HW) store ----
    o_ref[0] = (x + y).astype(o_ref.dtype)


@jax.jit
def resblock_forward(x_nchw, w1, b1, w2, b2):
    """x_nchw: [B, Cin, H, W]; w1: [Nh, Cin, 3, 3] (OIHW); w2: [Cin, Nh, 3, 3]."""
    B, Cin, H, W = x_nchw.shape
    Nh = w1.shape[0]
    HW = H * W
    PADW = HW + 2 * (W + 1)

    # NCHW-flattened I/O: free reshapes, no transposes, no padded-image copy.
    x2 = x_nchw.reshape(B, Cin, HW)

    # Per-tap 2-D weight matrices, pre-reshaped so the kernel never relayouts.
    w1r = jnp.transpose(w1, (2, 3, 0, 1)).reshape(9, Nh, Cin).astype(jnp.float32)
    w2r = jnp.transpose(w2, (2, 3, 0, 1)).reshape(9, Cin, Nh).astype(jnp.float32)
    b1r = b1.reshape(Nh, 1).astype(jnp.float32)
    b2r = b2.reshape(Cin, 1).astype(jnp.float32)

    # 0/1 column-validity masks for the dx = -1 / +1 taps (left/right edge of
    # the implicit zero padding).
    cols = jnp.arange(HW, dtype=jnp.int32) % W
    cmask = jnp.stack([cols >= 1, cols <= W - 2]).astype(jnp.float32)  # (2, HW)

    kernel = functools.partial(resblock_kernel, W=W)

    out2 = pl.pallas_call(
        kernel,
        out_shape=jax.ShapeDtypeStruct((B, Cin, HW), x_nchw.dtype),
        grid_spec=pltpu.PrefetchScalarGridSpec(
            num_scalar_prefetch=0,
            # One batch element per step: with B>=2 both v7x TensorCores get
            # work ("parallel"); overhead is negligible on v5e/v6e.
            grid=(B,),
            in_specs=[
                pl.BlockSpec((1, Cin, HW), lambda b: (b, 0, 0)),
                pl.BlockSpec((2, HW), lambda b: (0, 0)),
                pl.BlockSpec((9, Nh, Cin), lambda b: (0, 0, 0)),
                pl.BlockSpec((Nh, 1), lambda b: (0, 0)),
                pl.BlockSpec((9, Cin, Nh), lambda b: (0, 0, 0)),
                pl.BlockSpec((Cin, 1), lambda b: (0, 0)),
            ],
            out_specs=pl.BlockSpec((1, Cin, HW), lambda b: (b, 0, 0)),
            scratch_shapes=[pltpu.VMEM((Cin, PADW), jnp.float32)],
        ),
        compiler_params=pltpu.CompilerParams(
            dimension_semantics=("parallel",)),
    )(x2, cmask, w1r, b1r, w2r, b2r)

    return out2.reshape(B, Cin, H, W)


def ref_forward(x, w1, b1, w2, b2):
    """Pure-JAX reference (NCHW), matches PyTorch ResBlock.forward."""
    dn = ('NCHW', 'OIHW', 'NCHW')
    h = lax.conv_general_dilated(x, w1, (1, 1), ((1, 1), (1, 1)),
                                 dimension_numbers=dn,
                                 precision=lax.Precision.HIGHEST)
    h = jax.nn.relu(h + b1.reshape(1, -1, 1, 1))
    y = lax.conv_general_dilated(h, w2, (1, 1), ((1, 1), (1, 1)),
                                 dimension_numbers=dn,
                                 precision=lax.Precision.HIGHEST)
    return x + (y + b2.reshape(1, -1, 1, 1))


if __name__ == "__main__":
    # Shapes consistent with ResBlock(ni=4): NCHW input [2, 4, 16, 16].
    B, ni, H, W = 2, 4, 16, 16
    nh = 128  # module default hidden width

    key = jax.random.PRNGKey(0)
    kx, kw1, kw2, kb2 = jax.random.split(key, 4)

    x = jax.random.normal(kx, (B, ni, H, W), dtype=jnp.float32)

    # conv1: kaiming_normal_ (fan_in = ni*3*3, gain = sqrt(2)); bias zeros.
    w1 = ((2.0 / (ni * 3 * 3)) ** 0.5) * jax.random.normal(
        kw1, (nh, ni, 3, 3), dtype=jnp.float32)
    b1 = jnp.zeros((nh,), jnp.float32)

    # Case 1: the actual PyTorch init (conv2 weight/bias zeroed) -> out == x.
    w2_zero = jnp.zeros((ni, nh, 3, 3), jnp.float32)
    b2_zero = jnp.zeros((ni,), jnp.float32)
    out0 = jax.block_until_ready(resblock_forward(x, w1, b1, w2_zero, b2_zero))
    ref0 = ref_forward(x, w1, b1, w2_zero, b2_zero)
    assert out0.shape == x.shape and out0.dtype == x.dtype
    assert jnp.allclose(out0, ref0, atol=1e-5, rtol=1e-5), "mismatch (zero-init conv2)"

    # Case 2: random nonzero conv2 weights/bias so the conv2 path, the tap
    # shifts and the boundary masks are actually exercised.
    w2 = ((2.0 / (nh * 3 * 3)) ** 0.5) * jax.random.normal(
        kw2, (ni, nh, 3, 3), dtype=jnp.float32)
    b2 = 0.1 * jax.random.normal(kb2, (ni,), jnp.float32)
    out1 = jax.block_until_ready(resblock_forward(x, w1, b1, w2, b2))
    ref1 = ref_forward(x, w1, b1, w2, b2)
    # Tolerance allows for MXU vs XLA-conv accumulation/pass differences while
    # still catching any structural (tap / shift / mask / bias) bug.
    assert jnp.allclose(out1, ref1, atol=2e-2, rtol=2e-2), "mismatch (random conv2)"

    print("KERNEL_OK")
</pallas_src>

<mosaic_0001>
module attributes {stable_mosaic.version = 11 : i64} {
  func.func @resblock_kernel(%arg0: i32, %arg1: memref<1x4x256xf32, #tpu.memory_space<vmem>>, %arg2: memref<2x256xf32, #tpu.memory_space<vmem>>, %arg3: memref<9x128x4xf32, #tpu.memory_space<vmem>>, %arg4: memref<128x1xf32, #tpu.memory_space<vmem>>, %arg5: memref<9x4x128xf32, #tpu.memory_space<vmem>>, %arg6: memref<4x1xf32, #tpu.memory_space<vmem>>, %arg7: memref<1x4x256xf32, #tpu.memory_space<vmem>>, %arg8: memref<4x290xf32, #tpu.memory_space<vmem>>) attributes {dimension_semantics = [#tpu.dimension_semantics<parallel>], iteration_bounds = array<i64: 2>, scalar_prefetch = 0 : i64, scratch_operands = 1 : i64, tpu.core_type = #tpu.core_type<tc>, window_params = [{transform_indices = @transform_0, window_bounds = array<i64: 1, 4, 256>}, {pipeline_mode = #tpu.pipeline_mode<synchronous>, transform_indices = @transform_1, window_bounds = array<i64: 2, 256>}, {pipeline_mode = #tpu.pipeline_mode<synchronous>, transform_indices = @transform_2, window_bounds = array<i64: 9, 128, 4>}, {pipeline_mode = #tpu.pipeline_mode<synchronous>, transform_indices = @transform_3, window_bounds = array<i64: 128, 1>}, {pipeline_mode = #tpu.pipeline_mode<synchronous>, transform_indices = @transform_4, window_bounds = array<i64: 9, 4, 128>}, {pipeline_mode = #tpu.pipeline_mode<synchronous>, transform_indices = @transform_5, window_bounds = array<i64: 4, 1>}, {transform_indices = @transform_6, window_bounds = array<i64: 1, 4, 256>}]} {
    %c0 = arith.constant 0 : index
    %c0_0 = arith.constant 0 : index
    %c0_1 = arith.constant 0 : index
    %0 = vector.load %arg1[%c0, %c0_0, %c0_1] : memref<1x4x256xf32, #tpu.memory_space<vmem>>, vector<1x4x256xf32>
    %1 = vector.shape_cast %0 : vector<1x4x256xf32> to vector<4x256xf32>
    %cst = arith.constant 0.000000e+00 : f32
    %2 = vector.broadcast %cst : f32 to vector<4x290xf32>
    %c0_2 = arith.constant 0 : index
    %c0_3 = arith.constant 0 : index
    %3 = vector.load %arg8[%c0_2, %c0_3] : memref<4x290xf32, #tpu.memory_space<vmem>>, vector<4x290xf32>
    tpu.vector_store %arg8[%c0_2, %c0_3], %2 {strides = array<i32>} : memref<4x290xf32, #tpu.memory_space<vmem>>, vector<4x290xf32>,
    %c0_4 = arith.constant 0 : index
    %c17 = arith.constant 17 : index
    %4 = vector.load %arg8[%c0_4, %c17] : memref<4x290xf32, #tpu.memory_space<vmem>>, vector<4x256xf32>
    tpu.vector_store %arg8[%c0_4, %c17], %1 {strides = array<i32>} : memref<4x290xf32, #tpu.memory_space<vmem>>, vector<4x256xf32>,
    %cst_5 = arith.constant 0.000000e+00 : f32
    %5 = vector.broadcast %cst_5 : f32 to vector<128x256xf32>
    %c0_6 = arith.constant 0 : index
    %c0_7 = arith.constant 0 : index
    %c0_8 = arith.constant 0 : index
    %6 = vector.load %arg3[%c0_6, %c0_7, %c0_8] : memref<9x128x4xf32, #tpu.memory_space<vmem>>, vector<1x128x4xf32>
    %7 = vector.shape_cast %6 : vector<1x128x4xf32> to vector<128x4xf32>
    %c0_9 = arith.constant 0 : index
    %c0_10 = arith.constant 0 : index
    %8 = vector.load %arg8[%c0_9, %c0_10] : memref<4x290xf32, #tpu.memory_space<vmem>>, vector<4x256xf32>
    %c0_11 = arith.constant 0 : index
    %c0_12 = arith.constant 0 : index
    %9 = vector.load %arg2[%c0_11, %c0_12] : memref<2x256xf32, #tpu.memory_space<vmem>>, vector<1x256xf32>
    %10 = vector.broadcast %9 : vector<1x256xf32> to vector<4x256xf32>
    %11 = arith.mulf %8, %10 : vector<4x256xf32>
    %cst_13 = arith.constant dense<0.000000e+00> : vector<128x256xf32>
    %12 = tpu.matmul %7, %11, %cst_13 {dimension_numbers = #tpu.dot_dimension_numbers<[1], [0], [0], [1], [0, 0, 1, 1], [], []>} : vector<128x4xf32>, vector<4x256xf32>, vector<128x256xf32> -> vector<128x256xf32>
    %13 = arith.addf %5, %12 : vector<128x256xf32>
    %c1 = arith.constant 1 : index
    %c0_14 = arith.constant 0 : index
    %c0_15 = arith.constant 0 : index
    %14 = vector.load %arg3[%c1, %c0_14, %c0_15] : memref<9x128x4xf32, #tpu.memory_space<vmem>>, vector<1x128x4xf32>
    %15 = vector.shape_cast %14 : vector<1x128x4xf32> to vector<128x4xf32>
    %c0_16 = arith.constant 0 : index
    %c1_17 = arith.constant 1 : index
    %16 = vector.load %arg8[%c0_16, %c1_17] : memref<4x290xf32, #tpu.memory_space<vmem>>, vector<4x256xf32>
    %cst_18 = arith.constant dense<0.000000e+00> : vector<128x256xf32>
    %17 = tpu.matmul %15, %16, %cst_18 {dimension_numbers = #tpu.dot_dimension_numbers<[1], [0], [0], [1], [0, 0, 1, 1], [], []>} : vector<128x4xf32>, vector<4x256xf32>, vector<128x256xf32> -> vector<128x256xf32>
    %18 = arith.addf %13, %17 : vector<128x256xf32>
    %c2 = arith.constant 2 : index
    %c0_19 = arith.constant 0 : index
    %c0_20 = arith.constant 0 : index
    %19 = vector.load %arg3[%c2, %c0_19, %c0_20] : memref<9x128x4xf32, #tpu.memory_space<vmem>>, vector<1x128x4xf32>
    %20 = vector.shape_cast %19 : vector<1x128x4xf32> to vector<128x4xf32>
    %c0_21 = arith.constant 0 : index
    %c2_22 = arith.constant 2 : index
    %21 = vector.load %arg8[%c0_21, %c2_22] : memref<4x290xf32, #tpu.memory_space<vmem>>, vector<4x256xf32>
    %c1_23 = arith.constant 1 : index
    %c0_24 = arith.constant 0 : index
    %22 = vector.load %arg2[%c1_23, %c0_24] : memref<2x256xf32, #tpu.memory_space<vmem>>, vector<1x256xf32>
    %23 = vector.broadcast %22 : vector<1x256xf32> to vector<4x256xf32>
    %24 = arith.mulf %21, %23 : vector<4x256xf32>
    %cst_25 = arith.constant dense<0.000000e+00> : vector<128x256xf32>
    %25 = tpu.matmul %20, %24, %cst_25 {dimension_numbers = #tpu.dot_dimension_numbers<[1], [0], [0], [1], [0, 0, 1, 1], [], []>} : vector<128x4xf32>, vector<4x256xf32>, vector<128x256xf32> -> vector<128x256xf32>
    %26 = arith.addf %18, %25 : vector<128x256xf32>
    %c3 = arith.constant 3 : index
    %c0_26 = arith.constant 0 : index
    %c0_27 = arith.constant 0 : index
    %27 = vector.load %arg3[%c3, %c0_26, %c0_27] : memref<9x128x4xf32, #tpu.memory_space<vmem>>, vector<1x128x4xf32>
    %28 = vector.shape_cast %27 : vector<1x128x4xf32> to vector<128x4xf32>
    %c0_28 = arith.constant 0 : index
    %c16 = arith.constant 16 : index
    %29 = vector.load %arg8[%c0_28, %c16] : memref<4x290xf32, #tpu.memory_space<vmem>>, vector<4x256xf32>
    %c0_29 = arith.constant 0 : index
    %c0_30 = arith.constant 0 : index
    %30 = vector.load %arg2[%c0_29, %c0_30] : memref<2x256xf32, #tpu.memory_space<vmem>>, vector<1x256xf32>
    %31 = vector.broadcast %30 : vector<1x256xf32> to vector<4x256xf32>
    %32 = arith.mulf %29, %31 : vector<4x256xf32>
    %cst_31 = arith.constant dense<0.000000e+00> : vector<128x256xf32>
    %33 = tpu.matmul %28, %32, %cst_31 {dimension_numbers = #tpu.dot_dimension_numbers<[1], [0], [0], [1], [0, 0, 1, 1], [], []>} : vector<128x4xf32>, vector<4x256xf32>, vector<128x256xf32> -> vector<128x256xf32>
    %34 = arith.addf %26, %33 : vector<128x256xf32>
    %c4 = arith.constant 4 : index
    %c0_32 = arith.constant 0 : index
    %c0_33 = arith.constant 0 : index
    %35 = vector.load %arg3[%c4, %c0_32, %c0_33] : memref<9x128x4xf32, #tpu.memory_space<vmem>>, vector<1x128x4xf32>
    %36 = vector.shape_cast %35 : vector<1x128x4xf32> to vector<128x4xf32>
    %c0_34 = arith.constant 0 : index
    %c17_35 = arith.constant 17 : index
    %37 = vector.load %arg8[%c0_34, %c17_35] : memref<4x290xf32, #tpu.memory_space<vmem>>, vector<4x256xf32>
    %cst_36 = arith.constant dense<0.000000e+00> : vector<128x256xf32>
    %38 = tpu.matmul %36, %37, %cst_36 {dimension_numbers = #tpu.dot_dimension_numbers<[1], [0], [0], [1], [0, 0, 1, 1], [], []>} : vector<128x4xf32>, vector<4x256xf32>, vector<128x256xf32> -> vector<128x256xf32>
    %39 = arith.addf %34, %38 : vector<128x256xf32>
    %c5 = arith.constant 5 : index
    %c0_37 = arith.constant 0 : index
    %c0_38 = arith.constant 0 : index
    %40 = vector.load %arg3[%c5, %c0_37, %c0_38] : memref<9x128x4xf32, #tpu.memory_space<vmem>>, vector<1x128x4xf32>
    %41 = vector.shape_cast %40 : vector<1x128x4xf32> to vector<128x4xf32>
    %c0_39 = arith.constant 0 : index
    %c18 = arith.constant 18 : index
    %42 = vector.load %arg8[%c0_39, %c18] : memref<4x290xf32, #tpu.memory_space<vmem>>, vector<4x256xf32>
    %c1_40 = arith.constant 1 : index
    %c0_41 = arith.constant 0 : index
    %43 = vector.load %arg2[%c1_40, %c0_41] : memref<2x256xf32, #tpu.memory_space<vmem>>, vector<1x256xf32>
    %44 = vector.broadcast %43 : vector<1x256xf32> to vector<4x256xf32>
    %45 = arith.mulf %42, %44 : vector<4x256xf32>
    %cst_42 = arith.constant dense<0.000000e+00> : vector<128x256xf32>
    %46 = tpu.matmul %41, %45, %cst_42 {dimension_numbers = #tpu.dot_dimension_numbers<[1], [0], [0], [1], [0, 0, 1, 1], [], []>} : vector<128x4xf32>, vector<4x256xf32>, vector<128x256xf32> -> vector<128x256xf32>
    %47 = arith.addf %39, %46 : vector<128x256xf32>
    %c6 = arith.constant 6 : index
    %c0_43 = arith.constant 0 : index
    %c0_44 = arith.constant 0 : index
    %48 = vector.load %arg3[%c6, %c0_43, %c0_44] : memref<9x128x4xf32, #tpu.memory_space<vmem>>, vector<1x128x4xf32>
    %49 = vector.shape_cast %48 : vector<1x128x4xf32> to vector<128x4xf32>
    %c0_45 = arith.constant 0 : index
    %c32 = arith.constant 32 : index
    %50 = vector.load %arg8[%c0_45, %c32] : memref<4x290xf32, #tpu.memory_space<vmem>>, vector<4x256xf32>
    %c0_46 = arith.constant 0 : index
    %c0_47 = arith.constant 0 : index
    %51 = vector.load %arg2[%c0_46, %c0_47] : memref<2x256xf32, #tpu.memory_space<vmem>>, vector<1x256xf32>
    %52 = vector.broadcast %51 : vector<1x256xf32> to vector<4x256xf32>
    %53 = arith.mulf %50, %52 : vector<4x256xf32>
    %cst_48 = arith.constant dense<0.000000e+00> : vector<128x256xf32>
    %54 = tpu.matmul %49, %53, %cst_48 {dimension_numbers = #tpu.dot_dimension_numbers<[1], [0], [0], [1], [0, 0, 1, 1], [], []>} : vector<128x4xf32>, vector<4x256xf32>, vector<128x256xf32> -> vector<128x256xf32>
    %55 = arith.addf %47, %54 : vector<128x256xf32>
    %c7 = arith.constant 7 : index
    %c0_49 = arith.constant 0 : index
    %c0_50 = arith.constant 0 : index
    %56 = vector.load %arg3[%c7, %c0_49, %c0_50] : memref<9x128x4xf32, #tpu.memory_space<vmem>>, vector<1x128x4xf32>
    %57 = vector.shape_cast %56 : vector<1x128x4xf32> to vector<128x4xf32>
    %c0_51 = arith.constant 0 : index
    %c33 = arith.constant 33 : index
    %58 = vector.load %arg8[%c0_51, %c33] : memref<4x290xf32, #tpu.memory_space<vmem>>, vector<4x256xf32>
    %cst_52 = arith.constant dense<0.000000e+00> : vector<128x256xf32>
    %59 = tpu.matmul %57, %58, %cst_52 {dimension_numbers = #tpu.dot_dimension_numbers<[1], [0], [0], [1], [0, 0, 1, 1], [], []>} : vector<128x4xf32>, vector<4x256xf32>, vector<128x256xf32> -> vector<128x256xf32>
    %60 = arith.addf %55, %59 : vector<128x256xf32>
    %c8 = arith.constant 8 : index
    %c0_53 = arith.constant 0 : index
    %c0_54 = arith.constant 0 : index
    %61 = vector.load %arg3[%c8, %c0_53, %c0_54] : memref<9x128x4xf32, #tpu.memory_space<vmem>>, vector<1x128x4xf32>
    %62 = vector.shape_cast %61 : vector<1x128x4xf32> to vector<128x4xf32>
    %c0_55 = arith.constant 0 : index
    %c34 = arith.constant 34 : index
    %63 = vector.load %arg8[%c0_55, %c34] : memref<4x290xf32, #tpu.memory_space<vmem>>, vector<4x256xf32>
    %c1_56 = arith.constant 1 : index
    %c0_57 = arith.constant 0 : index
    %64 = vector.load %arg2[%c1_56, %c0_57] : memref<2x256xf32, #tpu.memory_space<vmem>>, vector<1x256xf32>
    %65 = vector.broadcast %64 : vector<1x256xf32> to vector<4x256xf32>
    %66 = arith.mulf %63, %65 : vector<4x256xf32>
    %cst_58 = arith.constant dense<0.000000e+00> : vector<128x256xf32>
    %67 = tpu.matmul %62, %66, %cst_58 {dimension_numbers = #tpu.dot_dimension_numbers<[1], [0], [0], [1], [0, 0, 1, 1], [], []>} : vector<128x4xf32>, vector<4x256xf32>, vector<128x256xf32> -> vector<128x256xf32>
    %68 = arith.addf %60, %67 : vector<128x256xf32>
    %c0_59 = arith.constant 0 : index
    %c0_60 = arith.constant 0 : index
    %69 = vector.load %arg4[%c0_59, %c0_60] : memref<128x1xf32, #tpu.memory_space<vmem>>, vector<128x1xf32>
    %70 = vector.broadcast %69 : vector<128x1xf32> to vector<128x256xf32>
    %71 = arith.addf %68, %70 : vector<128x256xf32>
    %cst_61 = arith.constant 0.000000e+00 : f32
    %72 = vector.broadcast %cst_61 : f32 to vector<128x256xf32>
    %73 = arith.maximumf %71, %72 : vector<128x256xf32>
    %cst_62 = arith.constant 0.000000e+00 : f32
    %74 = vector.broadcast %cst_62 : f32 to vector<4x256xf32>
    %c0_63 = arith.constant 0 : index
    %c0_64 = arith.constant 0 : index
    %c0_65 = arith.constant 0 : index
    %75 = vector.load %arg5[%c0_63, %c0_64, %c0_65] : memref<9x4x128xf32, #tpu.memory_space<vmem>>, vector<1x4x128xf32>
    %76 = vector.shape_cast %75 : vector<1x4x128xf32> to vector<4x128xf32>
    %cst_66 = arith.constant dense<0.000000e+00> : vector<4x256xf32>
    %77 = tpu.matmul %76, %73, %cst_66 {dimension_numbers = #tpu.dot_dimension_numbers<[1], [0], [0], [1], [0, 0, 1, 1], [], []>} : vector<4x128xf32>, vector<128x256xf32>, vector<4x256xf32> -> vector<4x256xf32>
    %c0_67 = arith.constant 0 : index
    %c17_68 = arith.constant 17 : index
    %78 = vector.load %arg8[%c0_67, %c17_68] : memref<4x290xf32, #tpu.memory_space<vmem>>, vector<4x256xf32>
    tpu.vector_store %arg8[%c0_67, %c17_68], %77 {strides = array<i32>} : memref<4x290xf32, #tpu.memory_space<vmem>>, vector<4x256xf32>,
    %c0_69 = arith.constant 0 : index
    %c0_70 = arith.constant 0 : index
    %79 = vector.load %arg8[%c0_69, %c0_70] : memref<4x290xf32, #tpu.memory_space<vmem>>, vector<4x256xf32>
    %c0_71 = arith.constant 0 : index
    %c0_72 = arith.constant 0 : index
    %80 = vector.load %arg2[%c0_71, %c0_72] : memref<2x256xf32, #tpu.memory_space<vmem>>, vector<1x256xf32>
    %81 = vector.broadcast %80 : vector<1x256xf32> to vector<4x256xf32>
    %82 = arith.mulf %79, %81 : vector<4x256xf32>
    %83 = arith.addf %74, %82 : vector<4x256xf32>
    %c1_73 = arith.constant 1 : index
    %c0_74 = arith.constant 0 : index
    %c0_75 = arith.constant 0 : index
    %84 = vector.load %arg5[%c1_73, %c0_74, %c0_75] : memref<9x4x128xf32, #tpu.memory_space<vmem>>, vector<1x4x128xf32>
    %85 = vector.shape_cast %84 : vector<1x4x128xf32> to vector<4x128xf32>
    %cst_76 = arith.constant dense<0.000000e+00> : vector<4x256xf32>
    %86 = tpu.matmul %85, %73, %cst_76 {dimension_numbers = #tpu.dot_dimension_numbers<[1], [0], [0], [1], [0, 0, 1, 1], [], []>} : vector<4x128xf32>, vector<128x256xf32>, vector<4x256xf32> -> vector<4x256xf32>
    %c0_77 = arith.constant 0 : index
    %c17_78 = arith.constant 17 : index
    %87 = vector.load %arg8[%c0_77, %c17_78] : memref<4x290xf32, #tpu.memory_space<vmem>>, vector<4x256xf32>
    tpu.vector_store %arg8[%c0_77, %c17_78], %86 {strides = array<i32>} : memref<4x290xf32, #tpu.memory_space<vmem>>, vector<4x256xf32>,
    %c0_79 = arith.constant 0 : index
    %c1_80 = arith.constant 1 : index
    %88 = vector.load %arg8[%c0_79, %c1_80] : memref<4x290xf32, #tpu.memory_space<vmem>>, vector<4x256xf32>
    %89 = arith.addf %83, %88 : vector<4x256xf32>
    %c2_81 = arith.constant 2 : index
    %c0_82 = arith.constant 0 : index
    %c0_83 = arith.constant 0 : index
    %90 = vector.load %arg5[%c2_81, %c0_82, %c0_83] : memref<9x4x128xf32, #tpu.memory_space<vmem>>, vector<1x4x128xf32>
    %91 = vector.shape_cast %90 : vector<1x4x128xf32> to vector<4x128xf32>
    %cst_84 = arith.constant dense<0.000000e+00> : vector<4x256xf32>
    %92 = tpu.matmul %91, %73, %cst_84 {dimension_numbers = #tpu.dot_dimension_numbers<[1], [0], [0], [1], [0, 0, 1, 1], [], []>} : vector<4x128xf32>, vector<128x256xf32>, vector<4x256xf32> -> vector<4x256xf32>
    %c0_85 = arith.constant 0 : index
    %c17_86 = arith.constant 17 : index
    %93 = vector.load %arg8[%c0_85, %c17_86] : memref<4x290xf32, #tpu.memory_space<vmem>>, vector<4x256xf32>
    tpu.vector_store %arg8[%c0_85, %c17_86], %92 {strides = array<i32>} : memref<4x290xf32, #tpu.memory_space<vmem>>, vector<4x256xf32>,
    %c0_87 = arith.constant 0 : index
    %c2_88 = arith.constant 2 : index
    %94 = vector.load %arg8[%c0_87, %c2_88] : memref<4x290xf32, #tpu.memory_space<vmem>>, vector<4x256xf32>
    %c1_89 = arith.constant 1 : index
    %c0_90 = arith.constant 0 : index
    %95 = vector.load %arg2[%c1_89, %c0_90] : memref<2x256xf32, #tpu.memory_space<vmem>>, vector<1x256xf32>
    %96 = vector.broadcast %95 : vector<1x256xf32> to vector<4x256xf32>
    %97 = arith.mulf %94, %96 : vector<4x256xf32>
    %98 = arith.addf %89, %97 : vector<4x256xf32>
    %c3_91 = arith.constant 3 : index
    %c0_92 = arith.constant 0 : index
    %c0_93 = arith.constant 0 : index
    %99 = vector.load %arg5[%c3_91, %c0_92, %c0_93] : memref<9x4x128xf32, #tpu.memory_space<vmem>>, vector<1x4x128xf32>
    %100 = vector.shape_cast %99 : vector<1x4x128xf32> to vector<4x128xf32>
    %cst_94 = arith.constant dense<0.000000e+00> : vector<4x256xf32>
    %101 = tpu.matmul %100, %73, %cst_94 {dimension_numbers = #tpu.dot_dimension_numbers<[1], [0], [0], [1], [0, 0, 1, 1], [], []>} : vector<4x128xf32>, vector<128x256xf32>, vector<4x256xf32> -> vector<4x256xf32>
    %c0_95 = arith.constant 0 : index
    %c17_96 = arith.constant 17 : index
    %102 = vector.load %arg8[%c0_95, %c17_96] : memref<4x290xf32, #tpu.memory_space<vmem>>, vector<4x256xf32>
    tpu.vector_store %arg8[%c0_95, %c17_96], %101 {strides = array<i32>} : memref<4x290xf32, #tpu.memory_space<vmem>>, vector<4x256xf32>,
    %c0_97 = arith.constant 0 : index
    %c16_98 = arith.constant 16 : index
    %103 = vector.load %arg8[%c0_97, %c16_98] : memref<4x290xf32, #tpu.memory_space<vmem>>, vector<4x256xf32>
    %c0_99 = arith.constant 0 : index
    %c0_100 = arith.constant 0 : index
    %104 = vector.load %arg2[%c0_99, %c0_100] : memref<2x256xf32, #tpu.memory_space<vmem>>, vector<1x256xf32>
    %105 = vector.broadcast %104 : vector<1x256xf32> to vector<4x256xf32>
    %106 = arith.mulf %103, %105 : vector<4x256xf32>
    %107 = arith.addf %98, %106 : vector<4x256xf32>
    %c4_101 = arith.constant 4 : index
    %c0_102 = arith.constant 0 : index
    %c0_103 = arith.constant 0 : index
    %108 = vector.load %arg5[%c4_101, %c0_102, %c0_103] : memref<9x4x128xf32, #tpu.memory_space<vmem>>, vector<1x4x128xf32>
    %109 = vector.shape_cast %108 : vector<1x4x128xf32> to vector<4x128xf32>
    %cst_104 = arith.constant dense<0.000000e+00> : vector<4x256xf32>
    %110 = tpu.matmul %109, %73, %cst_104 {dimension_numbers = #tpu.dot_dimension_numbers<[1], [0], [0], [1], [0, 0, 1, 1], [], []>} : vector<4x128xf32>, vector<128x256xf32>, vector<4x256xf32> -> vector<4x256xf32>
    %c0_105 = arith.constant 0 : index
    %c17_106 = arith.constant 17 : index
    %111 = vector.load %arg8[%c0_105, %c17_106] : memref<4x290xf32, #tpu.memory_space<vmem>>, vector<4x256xf32>
    tpu.vector_store %arg8[%c0_105, %c17_106], %110 {strides = array<i32>} : memref<4x290xf32, #tpu.memory_space<vmem>>, vector<4x256xf32>,
    %c0_107 = arith.constant 0 : index
    %c17_108 = arith.constant 17 : index
    %112 = vector.load %arg8[%c0_107, %c17_108] : memref<4x290xf32, #tpu.memory_space<vmem>>, vector<4x256xf32>
    %113 = arith.addf %107, %112 : vector<4x256xf32>
    %c5_109 = arith.constant 5 : index
    %c0_110 = arith.constant 0 : index
    %c0_111 = arith.constant 0 : index
    %114 = vector.load %arg5[%c5_109, %c0_110, %c0_111] : memref<9x4x128xf32, #tpu.memory_space<vmem>>, vector<1x4x128xf32>
    %115 = vector.shape_cast %114 : vector<1x4x128xf32> to vector<4x128xf32>
    %cst_112 = arith.constant dense<0.000000e+00> : vector<4x256xf32>
    %116 = tpu.matmul %115, %73, %cst_112 {dimension_numbers = #tpu.dot_dimension_numbers<[1], [0], [0], [1], [0, 0, 1, 1], [], []>} : vector<4x128xf32>, vector<128x256xf32>, vector<4x256xf32> -> vector<4x256xf32>
    %c0_113 = arith.constant 0 : index
    %c17_114 = arith.constant 17 : index
    %117 = vector.load %arg8[%c0_113, %c17_114] : memref<4x290xf32, #tpu.memory_space<vmem>>, vector<4x256xf32>
    tpu.vector_store %arg8[%c0_113, %c17_114], %116 {strides = array<i32>} : memref<4x290xf32, #tpu.memory_space<vmem>>, vector<4x256xf32>,
    %c0_115 = arith.constant 0 : index
    %c18_116 = arith.constant 18 : index
    %118 = vector.load %arg8[%c0_115, %c18_116] : memref<4x290xf32, #tpu.memory_space<vmem>>, vector<4x256xf32>
    %c1_117 = arith.constant 1 : index
    %c0_118 = arith.constant 0 : index
    %119 = vector.load %arg2[%c1_117, %c0_118] : memref<2x256xf32, #tpu.memory_space<vmem>>, vector<1x256xf32>
    %120 = vector.broadcast %119 : vector<1x256xf32> to vector<4x256xf32>
    %121 = arith.mulf %118, %120 : vector<4x256xf32>
    %122 = arith.addf %113, %121 : vector<4x256xf32>
    %c6_119 = arith.constant 6 : index
    %c0_120 = arith.constant 0 : index
    %c0_121 = arith.constant 0 : index
    %123 = vector.load %arg5[%c6_119, %c0_120, %c0_121] : memref<9x4x128xf32, #tpu.memory_space<vmem>>, vector<1x4x128xf32>
    %124 = vector.shape_cast %123 : vector<1x4x128xf32> to vector<4x128xf32>
    %cst_122 = arith.constant dense<0.000000e+00> : vector<4x256xf32>
    %125 = tpu.matmul %124, %73, %cst_122 {dimension_numbers = #tpu.dot_dimension_numbers<[1], [0], [0], [1], [0, 0, 1, 1], [], []>} : vector<4x128xf32>, vector<128x256xf32>, vector<4x256xf32> -> vector<4x256xf32>
    %c0_123 = arith.constant 0 : index
    %c17_124 = arith.constant 17 : index
    %126 = vector.load %arg8[%c0_123, %c17_124] : memref<4x290xf32, #tpu.memory_space<vmem>>, vector<4x256xf32>
    tpu.vector_store %arg8[%c0_123, %c17_124], %125 {strides = array<i32>} : memref<4x290xf32, #tpu.memory_space<vmem>>, vector<4x256xf32>,
    %c0_125 = arith.constant 0 : index
    %c32_126 = arith.constant 32 : index
    %127 = vector.load %arg8[%c0_125, %c32_126] : memref<4x290xf32, #tpu.memory_space<vmem>>, vector<4x256xf32>
    %c0_127 = arith.constant 0 : index
    %c0_128 = arith.constant 0 : index
    %128 = vector.load %arg2[%c0_127, %c0_128] : memref<2x256xf32, #tpu.memory_space<vmem>>, vector<1x256xf32>
    %129 = vector.broadcast %128 : vector<1x256xf32> to vector<4x256xf32>
    %130 = arith.mulf %127, %129 : vector<4x256xf32>
    %131 = arith.addf %122, %130 : vector<4x256xf32>
    %c7_129 = arith.constant 7 : index
    %c0_130 = arith.constant 0 : index
    %c0_131 = arith.constant 0 : index
    %132 = vector.load %arg5[%c7_129, %c0_130, %c0_131] : memref<9x4x128xf32, #tpu.memory_space<vmem>>, vector<1x4x128xf32>
    %133 = vector.shape_cast %132 : vector<1x4x128xf32> to vector<4x128xf32>
    %cst_132 = arith.constant dense<0.000000e+00> : vector<4x256xf32>
    %134 = tpu.matmul %133, %73, %cst_132 {dimension_numbers = #tpu.dot_dimension_numbers<[1], [0], [0], [1], [0, 0, 1, 1], [], []>} : vector<4x128xf32>, vector<128x256xf32>, vector<4x256xf32> -> vector<4x256xf32>
    %c0_133 = arith.constant 0 : index
    %c17_134 = arith.constant 17 : index
    %135 = vector.load %arg8[%c0_133, %c17_134] : memref<4x290xf32, #tpu.memory_space<vmem>>, vector<4x256xf32>
    tpu.vector_store %arg8[%c0_133, %c17_134], %134 {strides = array<i32>} : memref<4x290xf32, #tpu.memory_space<vmem>>, vector<4x256xf32>,
    %c0_135 = arith.constant 0 : index
    %c33_136 = arith.constant 33 : index
    %136 = vector.load %arg8[%c0_135, %c33_136] : memref<4x290xf32, #tpu.memory_space<vmem>>, vector<4x256xf32>
    %137 = arith.addf %131, %136 : vector<4x256xf32>
    %c8_137 = arith.constant 8 : index
    %c0_138 = arith.constant 0 : index
    %c0_139 = arith.constant 0 : index
    %138 = vector.load %arg5[%c8_137, %c0_138, %c0_139] : memref<9x4x128xf32, #tpu.memory_space<vmem>>, vector<1x4x128xf32>
    %139 = vector.shape_cast %138 : vector<1x4x128xf32> to vector<4x128xf32>
    %cst_140 = arith.constant dense<0.000000e+00> : vector<4x256xf32>
    %140 = tpu.matmul %139, %73, %cst_140 {dimension_numbers = #tpu.dot_dimension_numbers<[1], [0], [0], [1], [0, 0, 1, 1], [], []>} : vector<4x128xf32>, vector<128x256xf32>, vector<4x256xf32> -> vector<4x256xf32>
    %c0_141 = arith.constant 0 : index
    %c17_142 = arith.constant 17 : index
    %141 = vector.load %arg8[%c0_141, %c17_142] : memref<4x290xf32, #tpu.memory_space<vmem>>, vector<4x256xf32>
    tpu.vector_store %arg8[%c0_141, %c17_142], %140 {strides = array<i32>} : memref<4x290xf32, #tpu.memory_space<vmem>>, vector<4x256xf32>,
    %c0_143 = arith.constant 0 : index
    %c34_144 = arith.constant 34 : index
    %142 = vector.load %arg8[%c0_143, %c34_144] : memref<4x290xf32, #tpu.memory_space<vmem>>, vector<4x256xf32>
    %c1_145 = arith.constant 1 : index
    %c0_146 = arith.constant 0 : index
    %143 = vector.load %arg2[%c1_145, %c0_146] : memref<2x256xf32, #tpu.memory_space<vmem>>, vector<1x256xf32>
    %144 = vector.broadcast %143 : vector<1x256xf32> to vector<4x256xf32>
    %145 = arith.mulf %142, %144 : vector<4x256xf32>
    %146 = arith.addf %137, %145 : vector<4x256xf32>
    %c0_147 = arith.constant 0 : index
    %c0_148 = arith.constant 0 : index
    %147 = vector.load %arg6[%c0_147, %c0_148] : memref<4x1xf32, #tpu.memory_space<vmem>>, vector<4x1xf32>
    %148 = vector.broadcast %147 : vector<4x1xf32> to vector<4x256xf32>
    %149 = arith.addf %146, %148 : vector<4x256xf32>
    %150 = arith.addf %1, %149 : vector<4x256xf32>
    %c0_149 = arith.constant 0 : index
    %c0_150 = arith.constant 0 : index
    %c0_151 = arith.constant 0 : index
    %151 = vector.load %arg7[%c0_149, %c0_150, %c0_151] : memref<1x4x256xf32, #tpu.memory_space<vmem>>, vector<1x4x256xf32>
    %152 = vector.shape_cast %151 : vector<1x4x256xf32> to vector<4x256xf32>
    %153 = vector.shape_cast %150 : vector<4x256xf32> to vector<1x4x256xf32>
    tpu.vector_store %arg7[%c0_149, %c0_150, %c0_151], %153 {strides = array<i32>} : memref<1x4x256xf32, #tpu.memory_space<vmem>>, vector<1x4x256xf32>,
    return
  }
  func.func @transform_0(%arg0: i32) -> (i32, i32, i32) {
    %c0_i32 = arith.constant 0 : i32
    %c0_i32_0 = arith.constant 0 : i32
    %c0_i32_1 = arith.constant 0 : i32
    return %arg0, %c0_i32, %c0_i32_0 : i32, i32, i32
  }
  func.func @transform_1(%arg0: i32) -> (i32, i32) {
    %c0_i32 = arith.constant 0 : i32
    %c0_i32_0 = arith.constant 0 : i32
    %c0_i32_1 = arith.constant 0 : i32
    return %c0_i32, %c0_i32_0 : i32, i32
  }
  func.func @transform_2(%arg0: i32) -> (i32, i32, i32) {
    %c0_i32 = arith.constant 0 : i32
    %c0_i32_0 = arith.constant 0 : i32
    %c0_i32_1 = arith.constant 0 : i32
    %c0_i32_2 = arith.constant 0 : i32
    return %c0_i32, %c0_i32_0, %c0_i32_1 : i32, i32, i32
  }
  func.func @transform_3(%arg0: i32) -> (i32, i32) {
    %c0_i32 = arith.constant 0 : i32
    %c0_i32_0 = arith.constant 0 : i32
    %c0_i32_1 = arith.constant 0 : i32
    return %c0_i32, %c0_i32_0 : i32, i32
  }
  func.func @transform_4(%arg0: i32) -> (i32, i32, i32) {
    %c0_i32 = arith.constant 0 : i32
    %c0_i32_0 = arith.constant 0 : i32
    %c0_i32_1 = arith.constant 0 : i32
    %c0_i32_2 = arith.constant 0 : i32
    return %c0_i32, %c0_i32_0, %c0_i32_1 : i32, i32, i32
  }
  func.func @transform_5(%arg0: i32) -> (i32, i32) {
    %c0_i32 = arith.constant 0 : i32
    %c0_i32_0 = arith.constant 0 : i32
    %c0_i32_1 = arith.constant 0 : i32
    return %c0_i32, %c0_i32_0 : i32, i32
  }
  func.func @transform_6(%arg0: i32) -> (i32, i32, i32) {
    %c0_i32 = arith.constant 0 : i32
    %c0_i32_0 = arith.constant 0 : i32
    %c0_i32_1 = arith.constant 0 : i32
    return %arg0, %c0_i32, %c0_i32_0 : i32, i32, i32
  }
}

</mosaic_0001>

<bundles_post_ra>
// kernel: resblock_forward.1
= control target key start
LH: loop header
LB: loop body
LE: loop exit
PB: predicated region body
PF: predicated region fallthrough
CT: control target
= control target key end

     0   :  { %s4905_s21 = smov 0   ;;  %s6253_s0 = inlined_call_operand.vmem [shape: f32[2,4,256], index: 0, kind: input, shape index: {}]   ;;  %s6254_s1 = inlined_call_operand.vmem [shape: f32[2,256], index: 1, kind: input, shape index: {}]   ;;  %s6255_s2 = inlined_call_operand.vmem [shape: f32[9,128,4], index: 2, kind: input, shape index: {}]   ;;  %s6256_s3 = inlined_call_operand.vmem [shape: f32[128,1], index: 3, kind: input, shape index: {}]   ;;  %s6257_s4 = inlined_call_operand.vmem [shape: f32[9,4,128], index: 4, kind: input, shape index: {}]   ;;  %s6258_s5 = inlined_call_operand.vmem [shape: f32[4,1], index: 5, kind: input, shape index: {}]   ;;  %s6259_s6 = inlined_call_operand.vmem [shape: f32[2,4,256], index: 6, kind: output, shape index: {}]  }
   0x1 LB: > { %s3957_s22 = sadd.s32 4294967295, %s4851_s21   ;;  %p3961_p0 = scmp.ge.s32.totalorder %s4851_s21, 1  ;;  %s4851_s21 = sphi %s4905_s21, %s16_s21  }
   0x2   : > { %p212_p1 = scmp.lt.s32.totalorder %s4851_s21, 3 }
   0x4   : > { %p213_p2 = pnand %p3961_p0, %p212_p1 }
   0x5   : > { %p242_p3 = scmp.lt.s32.totalorder (!%p213_p2), %s3957_s22, 1  ;;  %v289_v0 = vlaneseq (!%p213_p2)  ;;  %v4853_v1 = vmov (!%p213_p2), 0.0   ;;  %vm254_vm0 = vcmask (!%p213_p2), 273408   ;;  %v4034_v3 = vld [vmem:[%s6254_s1 + $0x1] ss:$2 sm:$0x3] (!%p213_p2) }
   0x6   : > { %216 = sbr.rel (%p213_p2) target bundleno = 1666 (0x682), region = 44  ;;  %253 = vst [vmem:[#allocation2] sm:$0xff] (!%p213_p2), %v4853_v1  ;;  %928 = vmatprep.mubr.f32.mxu0 (!%p213_p2), %v4853_v1  ;;  %448 = vmatprep.mubr.f32.mxu1 (!%p213_p2), %v4853_v1  ;;  %255 = vst.msk [vmem:[#allocation2 + $0x8] sm:$0xf] (!%p213_p2), %vm254_vm0, %v4853_v1  ;;  %s4854_s7 = smov (!%p213_p2), 17   ;;  %vm264_vm1 = vcmask (!%p213_p2), 1043592  }
   0x7   : > { %v4918_v2 = vshrl.u32 (!%p213_p2), %v289_v0, 7  ;;  %v287_v4 = vld [vmem:[%s6254_s1] ss:$2 sm:$0x3] (!%p213_p2)  ;;  %s4855_s8 = smov (!%p213_p2), 16   ;;  %s4856_s9 = smov (!%p213_p2), 2  }
   0x8   : > { %vm265_vm2 = vcmask (!%p213_p2), 1047556   ;;  %vm260_vm3 = vcmask (!%p213_p2), 138240   ;;  %vm268_vm4 = vcmask (!%p213_p2), 134144   ;;  %vm1079_vm6 = vcmask (!%p213_p2), 130048   ;;  %s4857_s10 = smov (!%p213_p2), 126   ;;  %s4858_s11 = smov (!%p213_p2), 112  }
   0x9   : > { %v4929_v5 = vsub.s32 (!%p213_p2), 0, %v4918_v2  ;;  %v4932_v6 = vsub.s32 (!%p213_p2), 1, %v4918_v2  ;;  %vm4955_vm5 = vmor (!%p213_p2), %vm265_vm2, %vm264_vm1  ;;  %vm794_vm7 = vcmask (!%p213_p2), 15360   ;;  %s4859_s12 = smov (!%p213_p2), 111   ;;  %s4860_s13 = smov (!%p213_p2), 18   ;;  %vm809_vm8 = vcmask (!%p213_p2), 1031168  }
   0xa   : > { %s4861_s14 = smov (!%p213_p2), 32   ;;  %vm379_vm9 = vcmask (!%p213_p2), 1043456   ;;  %vm330_vm10 = vcmask (!%p213_p2), 31744   ;;  %v4018_v40 = vld [vmem:[%s6255_s2 + $0x100] sm:$0xff] (!%p213_p2)  ;;  %vm1094_vm11 = vcmask (!%p213_p2), 916480   ;;  %v4019_v44 = vld [vmem:[%s6255_s2 + $0x108] sm:$0xff] (!%p213_p2) }
   0xb   : > { %v785_v8 = vrot.slane (!%p213_p2), %v4034_v3, %v4929_v5  ;;  %v789_v9 = vrot.slane (!%p213_p2), %v4034_v3, %v4932_v6  ;;  %v292_v10 = vrot.slane (!%p213_p2), %v287_v4, %v4929_v5  ;;  %v296_v11 = vrot.slane (!%p213_p2), %v287_v4, %v4932_v6  ;;  %v4020_v48 = vld [vmem:[%s6255_s2 + $0x110] sm:$0xff] (!%p213_p2)  ;;  %v4021_v56 = vld [vmem:[%s6255_s2 + $0x118] sm:$0xff] (!%p213_p2)  ;;  %s4862_s25 = smov (!%p213_p2), 110   ;;  %v4022_v60 = vld [vmem:[%s6255_s2 + $0x120] sm:$0xff] (!%p213_p2)  ;;  %s4863_s16 = smov (!%p213_p2), 96  }
   0xc   : > { %vm1640_vm12 = vcmask (!%p213_p2), 146432   ;;  %vm1370_vm13 = vcmask (!%p213_p2), 908288   ;;  %vm1925_vm14 = vcmask (!%p213_p2), 261120   ;;  %v4023_v0 = vld [vmem:[%s6255_s2 + $0x128] sm:$0xff] (!%p213_p2)  ;;  %s4864_s19 = smov (!%p213_p2), 34   ;;  %s4865_s24 = smov (!%p213_p2), 127  }
   0xd   : > { %s6272_s22 = smov (!%p242_p3, %s3957_s22), 1  ;;  %v4947_v12 = vcombine.low %v785_v8, %v789_v9  ;;  %v4949_v13 = vcombine.low %v292_v10, %v296_v11  ;;  %v4024_v8 = vld [vmem:[%s6255_s2 + $0x130] sm:$0xff]  ;;  %v4025_v9 = vld [vmem:[%s6255_s2 + $0x138] sm:$0xff]  ;;  %v4026_v11 = vld [vmem:[%s6255_s2 + $0x140] sm:$0xff]  ;;  %s4866_s29 = smov 95   ;;  %vm6260_vm15 = vcmask 900096  }
   0xe   : > { %s6262_s27 = sshll.u32 %s6272_s22, 3  ;;  %vm6261_vm0 = vcmask 785408   ;;  %vm2486_vm1 = vcmask 277504   ;;  %vm327_vm2 = vcmask 1039360   ;;  %s6263_s15 = smov 94  }
   0xf   : > { %s4939_s30 = scalar_lea.vmem %s6253_s0, %s6262_s27  ;;  %1076 = vrot.lane.b32.xlu1 %v4949_v13, %s4855_s8 }
  0x10   : > { %v252_v7 = vld [vmem:[%s4939_s30] sm:$0xff] }
  0x11   : > { %257 = vrot.lane.b32.xlu0 %v252_v7, %s4854_s7 }
  0x15   : > { %791 = vrot.lane.b32.xlu0 %v4947_v12, %s4856_s9 }
  0x81   : > { %v1077_v18 = vpop.permute.xlu1 %1076 }
  0x82   : > { %v1078_v20 = vrot.slane %v1077_v18, 4 }
  0x83   : > { %v258_v14 = vpop.permute.xlu0 %257 }
  0x84   : > { %v259_v16 = vrot.slane %v258_v14, 4  ;;  %v1080_v22 = vsel %vm1079_vm6, %v1078_v20, %v1077_v18  ;;  %v4030_v18 = vld [vmem:[%s6255_s2 + $0x160] sm:$0xff] }
  0x86   : > { %v261_v17 = vsel %vm260_vm3, %v259_v16, %v258_v14  ;;  %269 = vst.msk [vmem:[#allocation2 + $0x8] sm:$0xf] %vm268_vm4, %v259_v16  ;;  %v4027_v14 = vld [vmem:[%s6255_s2 + $0x148] sm:$0xff]  ;;  %v4028_v16 = vld [vmem:[%s6255_s2 + $0x150] sm:$0xff] }
  0x87   : > { %267 = vst.msk [vmem:[#allocation2] sm:$0xff] %vm4955_vm5, %v261_v17  ;;  %v792_v19 = vpop.permute.xlu0 %791  ;;  %v4029_v17 = vld [vmem:[%s6255_s2 + $0x158] sm:$0xff] }
  0x88   : > { %v793_v21 = vrot.slane %v792_v19, 4 }
  0x8a   : > { %v795_v25 = vsel %vm794_vm7, %v793_v21, %v792_v19  ;;  %v4031_v19 = vld [vmem:[%s6255_s2 + $0x168] sm:$0xff] }
  0x8d   : > { %v778_v23 = vld [vmem:[#allocation2 + $0x8] sm:$0xf] }
  0x8e   : > { %v4964_v24 = vld [vmem:[#allocation2] sm:$0xff]  ;;  %v799_v26 = vmul.f32 %v793_v21, %v778_v23  ;;  %v1075_v31 = vld [vmem:[#allocation2 + $0x8] sm:$0xf]  ;;  %v4033_v21 = vld [vmem:[%s6255_s2 + $0x178] sm:$0xff] }
  0x8f   : > { %v798_v27 = vmul.f32 %v795_v25, %v4964_v24  ;;  %v1083_v28 = vmul.f32 %v1080_v22, %v4964_v24  ;;  %v1084_v32 = vmul.f32 %v1078_v20, %v1075_v31  ;;  %v4976_v33 = vcombine.high %v4964_v24, %v4964_v24  ;;  %v1360_v34 = vld [vmem:[#allocation2 + $0x8] sm:$0xf]  ;;  %v4032_v20 = vld [vmem:[%s6255_s2 + $0x170] sm:$0xff]  ;;  %v4053_v23 = vld [vmem:[%s6255_s2 + $0x180] sm:$0xff] }
  0x90   : > { %807 = vrot.lane.b32.xlu0 %v799_v26, %s4857_s10  ;;  %v1636_v50 = vld [vmem:[#allocation2 + $0x8] sm:$0xf]  ;;  %v4059_v31 = vld [vmem:[%s6255_s2 + $0x1b0] sm:$0xff] }
  0x91   : > { %v802_v29 = vcombine.high %v798_v27, %v798_v27  ;;  %v1087_v30 = vcombine.high %v1083_v28, %v1083_v28  ;;  %v1921_v3 = vld [vmem:[#allocation2 + $0x8] sm:$0xf] }
  0x92   : > { %v317_v10 = vld [vmem:[#allocation2 + $0x8] sm:$0xf] }
  0x93   : > { %805 = vrot.lane.b32.xlu1 %v802_v29, %s4857_s10  ;;  %v4054_v26 = vld [vmem:[%s6255_s2 + $0x188] sm:$0xff]  ;;  %v4057_v29 = vld [vmem:[%s6255_s2 + $0x1a0] sm:$0xff] }
  0x94   : > { %1090 = vrot.lane.b32.xlu0 %v1087_v30, %s4858_s11  ;;  %v4058_v30 = vld [vmem:[%s6255_s2 + $0x1a8] sm:$0xff] }
  0x97   : > { %803 = vrot.lane.b32.xlu1 %v798_v27, %s4857_s10  ;;  %v4055_v27 = vld [vmem:[%s6255_s2 + $0x190] sm:$0xff] }
  0x98   : > { %1088 = vrot.lane.b32.xlu0 %v1083_v28, %s4858_s11  ;;  %v4056_v28 = vld [vmem:[%s6255_s2 + $0x198] sm:$0xff] }
  0x9b   : > { %1092 = vrot.lane.b32.xlu1 %v1084_v32, %s4858_s11  ;;  %v4060_v32 = vld [vmem:[%s6255_s2 + $0x1b8] sm:$0xff] }
  0x9c   : > { %1366 = vrot.lane.b32.xlu0 %v4976_v33, %s4859_s12 }
  0x9f   : > { %1637 = vrot.lane.b32.xlu1 %v4947_v12, %s4860_s13 }
  0xa0   : > { %1364 = vrot.lane.b32.xlu0 %v4964_v24, %s4859_s12 }
  0xa3   : > { %1368 = vrot.lane.b32.xlu1 %v1360_v34, %s4859_s12  ;;  %v4062_v34 = vld [vmem:[%s6255_s2 + $0x1c8] sm:$0xff] }
  0xa7   : > { %1922 = vrot.lane.b32.xlu1 %v4949_v13, %s4861_s14 }
 0x102   : > { %v808_v35 = vpop.permute.xlu0 %807 }
 0x105   : > { %v806_v36 = vpop.permute.xlu1 %805 }
 0x106   : > { %v811_v37 = vsel %vm809_vm8, %v806_v36, %v808_v35  ;;  %v1091_v38 = vpop.permute.xlu0 %1090  ;;  %v4063_v35 = vld [vmem:[%s6255_s2 + $0x1d0] sm:$0xff] }
 0x107   : > { %4035 = vmatprep.subr.msk.mxu0 %vm379_vm9, %v811_v37  ;;  %v4065_v37 = vld [vmem:[%s6255_s2 + $0x1e0] sm:$0xff] }
 0x109   : > { %v804_v39 = vpop.permute.xlu1 %803 }
 0x10a   : > { %v810_v41 = vsel %vm809_vm8, %v804_v39, %v806_v36  ;;  %v1089_v42 = vpop.permute.xlu0 %1088  ;;  %v4064_v36 = vld [vmem:[%s6255_s2 + $0x1d8] sm:$0xff]  ;;  %v4067_v39 = vld [vmem:[%s6255_s2 + $0x1f0] sm:$0xff] }
 0x10b   : > { %4036 = vmatpush1.msk.msra.mxu0 %vm379_vm9, %v810_v41  ;;  %v1095_v46 = vsel %vm1094_vm11, %v1089_v42, %v1091_v38  ;;  %v4087_v41 = vld [vmem:[%s6255_s2 + $0x200] sm:$0xff] }
 0x10c   : > { %4037 = vmatmul.mubr.msk.f32.vlgmr.msra.gmra.mrb[0].mxu0 %vm330_vm10, %v4018_v40  ;;  %v4068_v40 = vld [vmem:[%s6255_s2 + $0x1f8] sm:$0xff] }
 0x10d   : > { %v1093_v43 = vpop.permute.xlu1 %1092  ;;  %934 = vmatprep.mubr.f32.mxu0 %v4853_v1 }
 0x10e   : > { %v1096_v45 = vsel %vm1094_vm11, %v1091_v38, %v1093_v43  ;;  %v5011_v53 = vpop.permute.xlu0 %1366  ;;  %v4066_v38 = vld [vmem:[%s6255_s2 + $0x1e8] sm:$0xff] }
 0x10f   : > { %4069 = vmatprep.subr.msk.mxu0 %vm379_vm9, %v1096_v45  ;;  %v4088_v45 = vld [vmem:[%s6255_s2 + $0x208] sm:$0xff] }
 0x110   : > { %4038 = vmatmul.mubr.msk.f32.gmra.mrb[2].mxu0 %vm330_vm10, %v4019_v44 }
 0x111   : > { %4070 = vmatpush1.msk.msra.mxu0 %vm379_vm9, %v1095_v46  ;;  %v1638_v47 = vpop.permute.xlu1 %1637  ;;  %940 = vmatprep.mubr.f32.mxu0 %v4853_v1 }
 0x112   : > { %v1639_v49 = vrot.slane %v1638_v47, 4  ;;  %v1365_v22 = vpop.permute.xlu0 %1364 }
 0x113   : > { %v1371_v25 = vsel %vm1370_vm13, %v1365_v22, %v5011_v53  ;;  %v3971_v22 = vld [vmem:[%s6255_s2 + $0xa8] sm:$0xff] }
 0x114   : > { %v1641_v51 = vsel %vm1640_vm12, %v1639_v49, %v1638_v47  ;;  %v1645_v52 = vmul.f32 %v1639_v49, %v1636_v50  ;;  %4039 = vmatmul.mubr.msk.f32.gmra.mrb[4].mxu0 %vm330_vm10, %v4020_v48  ;;  %v4089_v48 = vld [vmem:[%s6255_s2 + $0x210] sm:$0xff] }
 0x115   : > { %v1644_v54 = vmul.f32 %v1641_v51, %v4964_v24  ;;  %v1369_v55 = vpop.permute.xlu1 %1368  ;;  %946 = vmatprep.mubr.f32.mxu0 %v4853_v1 }
 0x116   : > { %v1372_v57 = vsel %vm1370_vm13, %v5011_v53, %v1369_v55  ;;  %1653 = vrot.lane.b32.xlu1 %v1645_v52, %s4862_s25  ;;  %v4090_v52 = vld [vmem:[%s6255_s2 + $0x218] sm:$0xff] }
 0x117   : > { %4103 = vmatprep.subr.msk.mxu0 %vm379_vm9, %v1372_v57  ;;  %v1648_v58 = vcombine.high %v1644_v54, %v1644_v54  ;;  %v4091_v57 = vld [vmem:[%s6255_s2 + $0x220] sm:$0xff] }
 0x118   : > { %4040 = vmatmul.mubr.msk.f32.gmra.mrb[6].mxu0 %vm330_vm10, %v4021_v56  ;;  %v2482_v56 = vld [vmem:[#allocation2 + $0x8] sm:$0xf] }
 0x119   : > { %1651 = vrot.lane.b32.xlu0 %v1648_v58, %s4862_s25  ;;  %v1923_v59 = vpop.permute.xlu1 %1922  ;;  %952 = vmatprep.mubr.f32.mxu0 %v4853_v1 }
 0x11a   : > { %v1924_v61 = vrot.slane %v1923_v59, 4 }
 0x11c   : > { %v1926_v62 = vsel %vm1925_vm14, %v1924_v61, %v1923_v59  ;;  %4041 = vmatmul.mubr.msk.f32.gmra.mrb[8].mxu0 %vm330_vm10, %v4022_v60  ;;  %v1930_v4 = vmul.f32 %v1924_v61, %v1921_v3  ;;  %v4092_v3 = vld [vmem:[%s6255_s2 + $0x228] sm:$0xff] }
 0x11d   : > { %v1929_v63 = vmul.f32 %v1926_v62, %v4964_v24  ;;  %1649 = vrot.lane.b32.xlu0 %v1644_v54, %s4862_s25  ;;  %958 = vmatprep.mubr.f32.mxu0 %v4853_v1 }
 0x11f   : > { %v1933_v7 = vcombine.high %v1929_v63, %v1929_v63 }
 0x120   : > { %4042 = vmatmul.mubr.msk.f32.gmra.mrb[10].mxu0 %vm330_vm10, %v4023_v0 }
 0x121   : > { %1938 = vrot.lane.b32.xlu0 %v1930_v4, %s4863_s16  ;;  %1936 = vrot.lane.b32.xlu1 %v1933_v7, %s4863_s16  ;;  %v299_v7 = vmul.f32 %v4964_v24, %v4949_v13  ;;  %v4094_v13 = vld [vmem:[%s6255_s2 + $0x238] sm:$0xff] }
 0x122   : > { %964 = vmatprep.mubr.f32.mxu0 %v4853_v1 }
 0x124   : > { %4043 = vmatmul.mubr.msk.f32.gmra.mrb[12].mxu0 %vm330_vm10, %v4024_v8  ;;  %v4093_v8 = vld [vmem:[%s6255_s2 + $0x230] sm:$0xff] }
 0x125   : > { %2483 = vrot.lane.b32.xlu0 %v4947_v12, %s4864_s19  ;;  %1934 = vrot.lane.b32.xlu1 %v1929_v63, %s4863_s16  ;;  %v2206_v12 = vld [vmem:[#allocation2 + $0x8] sm:$0xf] }
 0x126   : > { %970 = vmatprep.mubr.f32.mxu0 %v4853_v1 }
 0x128   : > { %4044 = vmatmul.mubr.msk.f32.gmra.mrb[14].mxu0 %vm330_vm10, %v4025_v9 }
 0x129   : > { %325 = vrot.lane.b32.xlu0 %v317_v10, %s4865_s24  ;;  %323 = vrot.lane.b32.xlu1 %v4976_v33, %s4865_s24  ;;  %v3966_v10 = vld [vmem:[%s6255_s2 + $0x80] sm:$0xff] }
 0x12a   : > { %976 = vmatprep.mubr.f32.mxu0 %v4853_v1 }
 0x12c   : > { %4045 = vmatmul.mubr.msk.f32.gmra.mrb[16].mxu0 %vm330_vm10, %v4026_v11 }
 0x12d   : > { %2214 = vrot.lane.b32.xlu0 %v2206_v12, %s4866_s29  ;;  %2212 = vrot.lane.b32.xlu1 %v4976_v33, %s4866_s29  ;;  %v4061_v33 = vld [vmem:[%s6255_s2 + $0x1c0] sm:$0xff]  ;;  %v546_v12 = vcombine.high %v299_v7, %v299_v7 }
 0x12e   : > { %982 = vmatprep.mubr.f32.mxu0 %v4853_v1 }
 0x130   : > { %4046 = vmatmul.mubr.msk.f32.gmra.mrb[18].mxu0 %vm330_vm10, %v4027_v14  ;;  %v4095_v14 = vld [vmem:[%s6255_s2 + $0x240] sm:$0xff] }
 0x131   : > { %2210 = vrot.lane.b32.xlu0 %v4964_v24, %s4866_s29  ;;  %321 = vrot.lane.b32.xlu1 %v4964_v24, %s4865_s24 }
 0x132   : > { %988 = vmatprep.mubr.f32.mxu0 %v4853_v1 }
 0x134   : > { %4047 = vmatmul.mubr.msk.f32.gmra.mrb[20].mxu0 %vm330_vm10, %v4028_v16  ;;  %v3968_v16 = vld [vmem:[%s6255_s2 + $0x90] sm:$0xff] }
 0x135   : > { %994 = vmatprep.mubr.f32.mxu0 %v4853_v1 }
 0x138   : > { %4048 = vmatmul.mubr.msk.f32.gmra.mrb[22].mxu0 %vm330_vm10, %v4029_v17  ;;  %v4096_v17 = vld [vmem:[%s6255_s2 + $0x248] sm:$0xff] }
 0x139   : > { %1000 = vmatprep.mubr.f32.mxu0 %v4853_v1 }
 0x13c   : > { %4049 = vmatmul.mubr.msk.f32.gmra.mrb[24].mxu0 %vm330_vm10, %v4030_v18  ;;  %v3969_v18 = vld [vmem:[%s6255_s2 + $0x98] sm:$0xff] }
 0x13d   : > { %1006 = vmatprep.mubr.f32.mxu0 %v4853_v1 }
 0x140   : > { %4050 = vmatmul.mubr.msk.f32.gmra.mrb[26].mxu0 %vm330_vm10, %v4031_v19  ;;  %v4097_v19 = vld [vmem:[%s6255_s2 + $0x250] sm:$0xff] }
 0x141   : > { %1012 = vmatprep.mubr.f32.mxu0 %v4853_v1 }
 0x144   : > { %4051 = vmatmul.mubr.msk.f32.gmra.mrb[28].mxu0 %vm330_vm10, %v4032_v20  ;;  %v3970_v20 = vld [vmem:[%s6255_s2 + $0xa0] sm:$0xff] }
 0x145   : > { %1018 = vmatprep.mubr.f32.mxu0 %v4853_v1 }
 0x148   : > { %4052 = vmatmul.mubr.msk.f32.gmra.mrb[30].mxu0 %vm330_vm10, %v4033_v21  ;;  %v4098_v21 = vld [vmem:[%s6255_s2 + $0x258] sm:$0xff] }
 0x149   : > { %1213 = vmatprep.mubr.f32.mxu0 %v4853_v1 }
 0x14c   : > { %4071 = vmatmul.mubr.msk.f32.vlgmr.msra.gmra.mrb[0].mxu0 %vm330_vm10, %v4053_v23  ;;  %v4099_v23 = vld [vmem:[%s6255_s2 + $0x260] sm:$0xff] }
 0x14d   : > { %4104 = vmatpush1.msk.msra.mxu0 %vm379_vm9, %v1371_v25  ;;  %1219 = vmatprep.mubr.f32.mxu0 %v4853_v1  ;;  %v3972_v25 = vld [vmem:[%s6255_s2 + $0xb0] sm:$0xff] }
 0x150   : > { %4072 = vmatmul.mubr.msk.f32.gmra.mrb[2].mxu0 %vm330_vm10, %v4054_v26  ;;  %v4100_v26 = vld [vmem:[%s6255_s2 + $0x268] sm:$0xff] }
 0x151   : > { %1225 = vmatprep.mubr.f32.mxu0 %v4853_v1 }
 0x154   : > { %4073 = vmatmul.mubr.msk.f32.gmra.mrb[4].mxu0 %vm330_vm10, %v4055_v27  ;;  %v3973_v27 = vld [vmem:[%s6255_s2 + $0xb8] sm:$0xff] }
 0x155   : > { %1231 = vmatprep.mubr.f32.mxu0 %v4853_v1 }
 0x158   : > { %4074 = vmatmul.mubr.msk.f32.gmra.mrb[6].mxu0 %vm330_vm10, %v4056_v28  ;;  %v4101_v28 = vld [vmem:[%s6255_s2 + $0x270] sm:$0xff] }
 0x159   : > { %1237 = vmatprep.mubr.f32.mxu0 %v4853_v1 }
 0x15c   : > { %4075 = vmatmul.mubr.msk.f32.gmra.mrb[8].mxu0 %vm330_vm10, %v4057_v29  ;;  %v3974_v29 = vld [vmem:[%s6255_s2 + $0xc0] sm:$0xff] }
 0x15d   : > { %1243 = vmatprep.mubr.f32.mxu0 %v4853_v1 }
 0x160   : > { %4076 = vmatmul.mubr.msk.f32.gmra.mrb[10].mxu0 %vm330_vm10, %v4058_v30  ;;  %v4102_v30 = vld [vmem:[%s6255_s2 + $0x278] sm:$0xff] }
 0x161   : > { %1249 = vmatprep.mubr.f32.mxu0 %v4853_v1 }
 0x164   : > { %4077 = vmatmul.mubr.msk.f32.gmra.mrb[12].mxu0 %vm330_vm10, %v4059_v31  ;;  %v3975_v31 = vld [vmem:[%s6255_s2 + $0xc8] sm:$0xff] }
 0x165   : > { %1255 = vmatprep.mubr.f32.mxu0 %v4853_v1 }
 0x168   : > { %4078 = vmatmul.mubr.msk.f32.gmra.mrb[14].mxu0 %vm330_vm10, %v4060_v32  ;;  %v4121_v32 = vld [vmem:[%s6255_s2 + $0x280] sm:$0xff] }
 0x169   : > { %1261 = vmatprep.mubr.f32.mxu0 %v4853_v1 }
 0x16c   : > { %4079 = vmatmul.mubr.msk.f32.gmra.mrb[16].mxu0 %vm330_vm10, %v4061_v33 }
 0x16d   : > { %1267 = vmatprep.mubr.f32.mxu0 %v4853_v1 }
 0x170   : > { %4080 = vmatmul.mubr.msk.f32.gmra.mrb[18].mxu0 %vm330_vm10, %v4062_v34  ;;  %v3976_v34 = vld [vmem:[%s6255_s2 + $0xd0] sm:$0xff] }
 0x171   : > { %1273 = vmatprep.mubr.f32.mxu0 %v4853_v1 }
 0x174   : > { %4081 = vmatmul.mubr.msk.f32.gmra.mrb[20].mxu0 %vm330_vm10, %v4063_v35 }
 0x175   : > { %1279 = vmatprep.mubr.f32.mxu0 %v4853_v1 }
 0x178   : > { %4082 = vmatmul.mubr.msk.f32.gmra.mrb[22].mxu0 %vm330_vm10, %v4064_v36 }
 0x179   : > { %1285 = vmatprep.mubr.f32.mxu0 %v4853_v1 }
 0x17c   : > { %4083 = vmatmul.mubr.msk.f32.gmra.mrb[24].mxu0 %vm330_vm10, %v4065_v37  ;;  %v4122_v37 = vld [vmem:[%s6255_s2 + $0x288] sm:$0xff] }
 0x17d   : > { %1291 = vmatprep.mubr.f32.mxu0 %v4853_v1 }
 0x180   : > { %4084 = vmatmul.mubr.msk.f32.gmra.mrb[26].mxu0 %vm330_vm10, %v4066_v38  ;;  %v3977_v38 = vld [vmem:[%s6255_s2 + $0xd8] sm:$0xff] }
 0x181   : > { %1297 = vmatprep.mubr.f32.mxu0 %v4853_v1 }
 0x184   : > { %4085 = vmatmul.mubr.msk.f32.gmra.mrb[28].mxu0 %vm330_vm10, %v4067_v39  ;;  %v4123_v39 = vld [vmem:[%s6255_s2 + $0x290] sm:$0xff] }
 0x185   : > { %1303 = vmatprep.mubr.f32.mxu0 %v4853_v1 }
 0x188   : > { %4086 = vmatmul.mubr.msk.f32.gmra.mrb[30].mxu0 %vm330_vm10, %v4068_v40  ;;  %v1654_v42 = vpop.permute.xlu1 %1653  ;;  %v3978_v40 = vld [vmem:[%s6255_s2 + $0xe0] sm:$0xff] }
 0x189   : > { %1489 = vmatprep.mubr.f32.mxu0 %v4853_v1 }
 0x18b   : > { %v1652_v43 = vpop.permute.xlu0 %1651 }
 0x18c   : > { %v1657_v44 = vsel %vm6260_vm15, %v1652_v43, %v1654_v42  ;;  %4105 = vmatmul.mubr.msk.f32.vlgmr.msra.gmra.mrb[0].mxu0 %vm330_vm10, %v4087_v41  ;;  %v4124_v41 = vld [vmem:[%s6255_s2 + $0x298] sm:$0xff]  ;;  %v3979_v42 = vld [vmem:[%s6255_s2 + $0xe8] sm:$0xff] }
 0x18d   : > { %4137 = vmatprep.subr.msk.mxu0 %vm379_vm9, %v1657_v44  ;;  %1495 = vmatprep.mubr.f32.mxu0 %v4853_v1  ;;  %v3980_v44 = vld [vmem:[%s6255_s2 + $0xf0] sm:$0xff] }
 0x18f   : > { %v1650_v46 = vpop.permute.xlu0 %1649 }
 0x190   : > { %v1656_v47 = vsel %vm6260_vm15, %v1650_v46, %v1652_v43  ;;  %4106 = vmatmul.mubr.msk.f32.gmra.mrb[2].mxu0 %vm330_vm10, %v4088_v45  ;;  %vm2216_vm15 = vcmask 777216   ;;  %v4125_v43 = vld [vmem:[%s6255_s2 + $0x2a0] sm:$0xff]  ;;  %v4126_v45 = vld [vmem:[%s6255_s2 + $0x2a8] sm:$0xff]  ;;  %v3981_v46 = vld [vmem:[%s6255_s2 + $0xf8] sm:$0xff] }
 0x191   : > { %4138 = vmatpush1.msk.msra.mxu0 %vm379_vm9, %v1656_v47  ;;  %1501 = vmatprep.mubr.f32.mxu0 %v4853_v1  ;;  %v4127_v47 = vld [vmem:[%s6255_s2 + $0x2b0] sm:$0xff] }
 0x193   : > { %v1939_v49 = vpop.permute.xlu0 %1938  ;;  %v5203_v50 = vpop.permute.xlu1 %1936 }
 0x194   : > { %v1942_v51 = vsel %vm6261_vm0, %v5203_v50, %v1939_v49  ;;  %4107 = vmatmul.mubr.msk.f32.gmra.mrb[4].mxu0 %vm330_vm10, %v4089_v48  ;;  %v270_v48 = vld [vmem:[%s6255_s2] sm:$0xff]  ;;  %v4128_v49 = vld [vmem:[%s6255_s2 + $0x2b8] sm:$0xff] }
 0x195   : > { %4171 = vmatprep.subr.msk.mxu0 %vm379_vm9, %v1942_v51  ;;  %1507 = vmatprep.mubr.f32.mxu0 %v4853_v1  ;;  %v4129_v51 = vld [vmem:[%s6255_s2 + $0x2c0] sm:$0xff] }
 0x197   : > { %v2484_v53 = vpop.permute.xlu0 %2483  ;;  %v5213_v54 = vpop.permute.xlu1 %1934 }
 0x198   : > { %v2485_v55 = vrot.slane %v2484_v53, 4  ;;  %4108 = vmatmul.mubr.msk.f32.gmra.mrb[6].mxu0 %vm330_vm10, %v4090_v52  ;;  %v1941_v35 = vsel %vm6261_vm0, %v5213_v54, %v5203_v50  ;;  %v271_v50 = vld [vmem:[%s6255_s2 + $0x8] sm:$0xff]  ;;  %v272_v52 = vld [vmem:[%s6255_s2 + $0x10] sm:$0xff]  ;;  %v273_v54 = vld [vmem:[%s6255_s2 + $0x18] sm:$0xff]  ;;  %vm2501_vm0 = vcmask 769024  }
 0x199   : > { %1513 = vmatprep.mubr.f32.mxu0 %v4853_v1 }
 0x19a   : > { %v2487_v58 = vsel %vm2486_vm1, %v2485_v55, %v2484_v53  ;;  %v2491_v59 = vmul.f32 %v2485_v55, %v2482_v56  ;;  %v4130_v53 = vld [vmem:[%s6255_s2 + $0x2c8] sm:$0xff]  ;;  %v4131_v55 = vld [vmem:[%s6255_s2 + $0x2d0] sm:$0xff]  ;;  %v274_v56 = vld [vmem:[%s6255_s2 + $0x20] sm:$0xff] }
 0x19b   : > { %v2490_v60 = vmul.f32 %v2487_v58, %v4964_v24  ;;  %v326_v61 = vpop.permute.xlu0 %325  ;;  %v324_v62 = vpop.permute.xlu1 %323  ;;  %v3967_v24 = vld [vmem:[%s6255_s2 + $0x88] sm:$0xff] }
 0x19c   : > { %4109 = vmatmul.mubr.msk.f32.gmra.mrb[8].mxu0 %vm330_vm10, %v4091_v57  ;;  %2499 = vrot.lane.b32.xlu0 %v2491_v59, %s6263_s15  ;;  %v329_v63 = vsel %vm327_vm2, %v324_v62, %v326_v61  ;;  %v4132_v57 = vld [vmem:[%s6255_s2 + $0x2d8] sm:$0xff]  ;;  %v275_v58 = vld [vmem:[%s6255_s2 + $0x28] sm:$0xff]  ;;  %v4133_v59 = vld [vmem:[%s6255_s2 + $0x2e0] sm:$0xff] }
 0x19d   : > { %3982 = vmatprep.subr.msk.mxu1 %vm379_vm9, %v329_v63  ;;  %1519 = vmatprep.mubr.f32.mxu0 %v4853_v1  ;;  %v2494_v0 = vcombine.high %v2490_v60, %v2490_v60  ;;  %v4134_v61 = vld [vmem:[%s6255_s2 + $0x2e8] sm:$0xff]  ;;  %v4135_v63 = vld [vmem:[%s6255_s2 + $0x2f0] sm:$0xff] }
 0x19f   : > { %2497 = vrot.lane.b32.xlu1 %v2494_v0, %s6263_s15  ;;  %v5231_v4 = vpop.permute.xlu1 %2212  ;;  %v2215_v33 = vpop.permute.xlu0 %2214  ;;  %v278_v0 = vld [vmem:[%s6255_s2 + $0x40] sm:$0xff] }
 0x1a0   : > { %4110 = vmatmul.mubr.msk.f32.gmra.mrb[10].mxu0 %vm330_vm10, %v4092_v3  ;;  %v2218_v36 = vsel %vm2216_vm15, %v5231_v4, %v2215_v33  ;;  %v4136_v3 = vld [vmem:[%s6255_s2 + $0x2f8] sm:$0xff]  ;;  %v4169_v33 = vld [vmem:[%s6255_s2 + $0x370] sm:$0xff] }
 0x1a1   : > { %1525 = vmatprep.mubr.f32.mxu0 %v4853_v1 }
 0x1a3   : > { %2495 = vrot.lane.b32.xlu1 %v2490_v60, %s6263_s15  ;;  %v322_v9 = vpop.permute.xlu1 %321  ;;  %v276_v60 = vld [vmem:[%s6255_s2 + $0x30] sm:$0xff] }
 0x1a4   : > { %4111 = vmatmul.mubr.msk.f32.gmra.mrb[12].mxu0 %vm330_vm10, %v4093_v8  ;;  %v328_v11 = vsel %vm327_vm2, %v322_v9, %v324_v62  ;;  %v277_v62 = vld [vmem:[%s6255_s2 + $0x38] sm:$0xff]  ;;  %v2211_v8 = vpop.permute.xlu0 %2210  ;;  %v4155_v9 = vld [vmem:[%s6255_s2 + $0x300] sm:$0xff] }
 0x1a5   : > { %3983 = vmatpush1.msk.msra.mxu1 %vm379_vm9, %v328_v11  ;;  %1531 = vmatprep.mubr.f32.mxu0 %v4853_v1  ;;  %v2217_v11 = vsel %vm2216_vm15, %v2211_v8, %v5231_v4  ;;  %v4202_v8 = vld [vmem:[%s6255_s2 + $0x3e8] sm:$0xff] }
 0x1a6   : > { %4000 = vmatprep.subr.msk.mxu1 %vm379_vm9, %v546_v12  ;;  %3984 = vmatmul.mubr.msk.f32.vlgmr.msra.gmra.mrb[0].mxu1 %vm330_vm10, %v3966_v10  ;;  %v280_v10 = vld [vmem:[%s6255_s2 + $0x50] sm:$0xff]  ;;  %v4156_v12 = vld [vmem:[%s6255_s2 + $0x308] sm:$0xff] }
 0x1a7   : > { %4001 = vmatpush1.msk.msra.mxu1 %vm379_vm9, %v299_v7  ;;  %454 = vmatprep.mubr.f32.mxu1 %v4853_v1  ;;  %v279_v7 = vld [vmem:[%s6255_s2 + $0x48] sm:$0xff] }
 0x1a8   : > { %4112 = vmatmul.mubr.msk.f32.gmra.mrb[14].mxu0 %vm330_vm10, %v4094_v13  ;;  %v281_v13 = vld [vmem:[%s6255_s2 + $0x58] sm:$0xff] }
 0x1a9   : > { %1537 = vmatprep.mubr.f32.mxu0 %v4853_v1 }
 0x1aa   : > { %3985 = vmatmul.mubr.msk.f32.gmra.mrb[2].mxu1 %vm330_vm10, %v3967_v24 }
 0x1ab   : > { %460 = vmatprep.mubr.f32.mxu1 %v4853_v1 }
 0x1ac   : > { %4113 = vmatmul.mubr.msk.f32.gmra.mrb[16].mxu0 %vm330_vm10, %v4095_v14  ;;  %v4157_v14 = vld [vmem:[%s6255_s2 + $0x310] sm:$0xff] }
 0x1ad   : > { %1543 = vmatprep.mubr.f32.mxu0 %v4853_v1 }
 0x1ae   : > { %3986 = vmatmul.mubr.msk.f32.gmra.mrb[4].mxu1 %vm330_vm10, %v3968_v16 }
 0x1af   : > { %466 = vmatprep.mubr.f32.mxu1 %v4853_v1 }
 0x1b0   : > { %4114 = vmatmul.mubr.msk.f32.gmra.mrb[18].mxu0 %vm330_vm10, %v4096_v17  ;;  %v282_v17 = vld [vmem:[%s6255_s2 + $0x60] sm:$0xff] }
 0x1b1   : > { %1549 = vmatprep.mubr.f32.mxu0 %v4853_v1 }
 0x1b2   : > { %3987 = vmatmul.mubr.msk.f32.gmra.mrb[6].mxu1 %vm330_vm10, %v3969_v18  ;;  %v4158_v18 = vld [vmem:[%s6255_s2 + $0x318] sm:$0xff] }
 0x1b3   : > { %472 = vmatprep.mubr.f32.mxu1 %v4853_v1 }
 0x1b4   : > { %4115 = vmatmul.mubr.msk.f32.gmra.mrb[20].mxu0 %vm330_vm10, %v4097_v19  ;;  %v283_v19 = vld [vmem:[%s6255_s2 + $0x68] sm:$0xff] }
 0x1b5   : > { %1555 = vmatprep.mubr.f32.mxu0 %v4853_v1 }
 0x1b6   : > { %3988 = vmatmul.mubr.msk.f32.gmra.mrb[8].mxu1 %vm330_vm10, %v3970_v20  ;;  %v4159_v20 = vld [vmem:[%s6255_s2 + $0x320] sm:$0xff] }
 0x1b7   : > { %478 = vmatprep.mubr.f32.mxu1 %v4853_v1 }
 0x1b8   : > { %4116 = vmatmul.mubr.msk.f32.gmra.mrb[22].mxu0 %vm330_vm10, %v4098_v21  ;;  %v284_v21 = vld [vmem:[%s6255_s2 + $0x70] sm:$0xff] }
 0x1b9   : > { %1561 = vmatprep.mubr.f32.mxu0 %v4853_v1 }
 0x1ba   : > { %3989 = vmatmul.mubr.msk.f32.gmra.mrb[10].mxu1 %vm330_vm10, %v3971_v22  ;;  %v4160_v22 = vld [vmem:[%s6255_s2 + $0x328] sm:$0xff] }
 0x1bb   : > { %484 = vmatprep.mubr.f32.mxu1 %v4853_v1 }
 0x1bc   : > { %4117 = vmatmul.mubr.msk.f32.gmra.mrb[24].mxu0 %vm330_vm10, %v4099_v23  ;;  %v285_v23 = vld [vmem:[%s6255_s2 + $0x78] sm:$0xff] }
 0x1bd   : > { %1567 = vmatprep.mubr.f32.mxu0 %v4853_v1 }
 0x1be   : > { %3990 = vmatmul.mubr.msk.f32.gmra.mrb[12].mxu1 %vm330_vm10, %v3972_v25  ;;  %v4161_v25 = vld [vmem:[%s6255_s2 + $0x330] sm:$0xff] }
 0x1bf   : > { %490 = vmatprep.mubr.f32.mxu1 %v4853_v1 }
 0x1c0   : > { %4118 = vmatmul.mubr.msk.f32.gmra.mrb[26].mxu0 %vm330_vm10, %v4100_v26  ;;  %v4162_v26 = vld [vmem:[%s6255_s2 + $0x338] sm:$0xff] }
 0x1c1   : > { %1573 = vmatprep.mubr.f32.mxu0 %v4853_v1 }
 0x1c2   : > { %3991 = vmatmul.mubr.msk.f32.gmra.mrb[14].mxu1 %vm330_vm10, %v3973_v27  ;;  %v4163_v27 = vld [vmem:[%s6255_s2 + $0x340] sm:$0xff] }
 0x1c3   : > { %496 = vmatprep.mubr.f32.mxu1 %v4853_v1 }
 0x1c4   : > { %4119 = vmatmul.mubr.msk.f32.gmra.mrb[28].mxu0 %vm330_vm10, %v4101_v28  ;;  %v4164_v28 = vld [vmem:[%s6255_s2 + $0x348] sm:$0xff] }
 0x1c5   : > { %1579 = vmatprep.mubr.f32.mxu0 %v4853_v1 }
 0x1c6   : > { %3992 = vmatmul.mubr.msk.f32.gmra.mrb[16].mxu1 %vm330_vm10, %v3974_v29  ;;  %v4165_v29 = vld [vmem:[%s6255_s2 + $0x350] sm:$0xff] }
 0x1c7   : > { %502 = vmatprep.mubr.f32.mxu1 %v4853_v1 }
 0x1c8   : > { %4120 = vmatmul.mubr.msk.f32.gmra.mrb[30].mxu0 %vm330_vm10, %v4102_v30  ;;  %v4166_v30 = vld [vmem:[%s6255_s2 + $0x358] sm:$0xff] }
 0x1c9   : > { %1774 = vmatprep.mubr.f32.mxu0 %v4853_v1 }
 0x1ca   : > { %3993 = vmatmul.mubr.msk.f32.gmra.mrb[18].mxu1 %vm330_vm10, %v3975_v31  ;;  %v4167_v31 = vld [vmem:[%s6255_s2 + $0x360] sm:$0xff] }
 0x1cb   : > { %508 = vmatprep.mubr.f32.mxu1 %v4853_v1 }
 0x1cc   : > { %4139 = vmatmul.mubr.msk.f32.vlgmr.msra.gmra.mrb[0].mxu0 %vm330_vm10, %v4121_v32  ;;  %v4168_v32 = vld [vmem:[%s6255_s2 + $0x368] sm:$0xff] }
 0x1cd   : > { %4172 = vmatpush1.msk.msra.mxu0 %vm379_vm9, %v1941_v35  ;;  %1780 = vmatprep.mubr.f32.mxu0 %v4853_v1  ;;  %v2749_v35 = vld [vmem:[%s6256_s3] sm:$0xff] }
 0x1ce   : > { %4205 = vmatprep.subr.msk.mxu0 %vm379_vm9, %v2218_v36  ;;  %3994 = vmatmul.mubr.msk.f32.gmra.mrb[20].mxu1 %vm330_vm10, %v3976_v34  ;;  %v4170_v34 = vld [vmem:[%s6255_s2 + $0x378] sm:$0xff]  ;;  %v2750_v36 = vld [vmem:[%s6256_s3 + $0x8] sm:$0xff] }
 0x1cf   : > { %514 = vmatprep.mubr.f32.mxu1 %v4853_v1 }
 0x1d0   : > { %4140 = vmatmul.mubr.msk.f32.gmra.mrb[2].mxu0 %vm330_vm10, %v4122_v37 }
 0x1d1   : > { %1786 = vmatprep.mubr.f32.mxu0 %v4853_v1 }
 0x1d2   : > { %3995 = vmatmul.mubr.msk.f32.gmra.mrb[22].mxu1 %vm330_vm10, %v3977_v38  ;;  %v4189_v38 = vld [vmem:[%s6255_s2 + $0x380] sm:$0xff] }
 0x1d3   : > { %520 = vmatprep.mubr.f32.mxu1 %v4853_v1 }
 0x1d4   : > { %4141 = vmatmul.mubr.msk.f32.gmra.mrb[4].mxu0 %vm330_vm10, %v4123_v39  ;;  %v4868_v39 = vmov 0  }
 0x1d5   : > { %1792 = vmatprep.mubr.f32.mxu0 %v4853_v1  ;;  %4842 = vset.pattern.permute.xlu1 %v4868_v39 }
 0x1d6   : > { %3996 = vmatmul.mubr.msk.f32.gmra.mrb[24].mxu1 %vm330_vm10, %v3978_v40  ;;  %4841 = vset.pattern.permute.xlu0 %v4868_v39  ;;  %v2751_v40 = vld [vmem:[%s6256_s3 + $0x10] sm:$0xff] }
 0x1d7   : > { %526 = vmatprep.mubr.f32.mxu1 %v4853_v1  ;;  %2772 = vperm.xlu1 %4842, %v2750_v36  }
 0x1d8   : > { %4142 = vmatmul.mubr.msk.f32.gmra.mrb[6].mxu0 %vm330_vm10, %v4124_v41  ;;  %2767 = vperm.xlu0 %4841, %v2749_v35  }
 0x1d9   : > { %1798 = vmatprep.mubr.f32.mxu0 %v4853_v1 }
 0x1da   : > { %3997 = vmatmul.mubr.msk.f32.gmra.mrb[26].mxu1 %vm330_vm10, %v3979_v42  ;;  %v2752_v42 = vld [vmem:[%s6256_s3 + $0x18] sm:$0xff] }
 0x1db   : > { %532 = vmatprep.mubr.f32.mxu1 %v4853_v1  ;;  %2777 = vperm.xlu1 %4842, %v2751_v40  }
 0x1dc   : > { %4143 = vmatmul.mubr.msk.f32.gmra.mrb[8].mxu0 %vm330_vm10, %v4125_v43  ;;  %v4190_v43 = vld [vmem:[%s6255_s2 + $0x388] sm:$0xff]  ;;  %2782 = vperm.xlu0 %4841, %v2752_v42  }
 0x1dd   : > { %1804 = vmatprep.mubr.f32.mxu0 %v4853_v1 }
 0x1de   : > { %3998 = vmatmul.mubr.msk.f32.gmra.mrb[28].mxu1 %vm330_vm10, %v3980_v44  ;;  %v2753_v44 = vld [vmem:[%s6256_s3 + $0x20] sm:$0xff] }
 0x1df   : > { %538 = vmatprep.mubr.f32.mxu1 %v4853_v1  ;;  %2787 = vperm.xlu1 %4842, %v2753_v44  }
 0x1e0   : > { %4144 = vmatmul.mubr.msk.f32.gmra.mrb[10].mxu0 %vm330_vm10, %v4126_v45  ;;  %v2754_v45 = vld [vmem:[%s6256_s3 + $0x28] sm:$0xff] }
 0x1e1   : > { %1810 = vmatprep.mubr.f32.mxu0 %v4853_v1  ;;  %2792 = vperm.xlu0 %4841, %v2754_v45  }
 0x1e2   : > { %3999 = vmatmul.mubr.msk.f32.gmra.mrb[30].mxu1 %vm330_vm10, %v3981_v46  ;;  %v4191_v46 = vld [vmem:[%s6255_s2 + $0x390] sm:$0xff] }
 0x1e3   : > { %663 = vmatprep.mubr.f32.mxu1 %v4853_v1 }
 0x1e4   : > { %4145 = vmatmul.mubr.msk.f32.gmra.mrb[12].mxu0 %vm330_vm10, %v4127_v47  ;;  %v2755_v47 = vld [vmem:[%s6256_s3 + $0x30] sm:$0xff] }
 0x1e5   : > { %1816 = vmatprep.mubr.f32.mxu0 %v4853_v1  ;;  %2797 = vperm.xlu1 %4842, %v2755_v47  }
 0x1e6   : > { %4002 = vmatmul.mubr.msk.f32.vlgmr.msra.gmra.mrb[0].mxu1 %vm330_vm10, %v270_v48  ;;  %v2756_v48 = vld [vmem:[%s6256_s3 + $0x38] sm:$0xff] }
 0x1e7   : > { %669 = vmatprep.mubr.f32.mxu1 %v4853_v1  ;;  %2802 = vperm.xlu0 %4841, %v2756_v48  }
 0x1e8   : > { %4146 = vmatmul.mubr.msk.f32.gmra.mrb[14].mxu0 %vm330_vm10, %v4128_v49  ;;  %v4192_v49 = vld [vmem:[%s6255_s2 + $0x398] sm:$0xff] }
 0x1e9   : > { %1822 = vmatprep.mubr.f32.mxu0 %v4853_v1 }
 0x1ea   : > { %4003 = vmatmul.mubr.msk.f32.gmra.mrb[2].mxu1 %vm330_vm10, %v271_v50  ;;  %v2757_v50 = vld [vmem:[%s6256_s3 + $0x40] sm:$0xff] }
 0x1eb   : > { %675 = vmatprep.mubr.f32.mxu1 %v4853_v1  ;;  %2807 = vperm.xlu1 %4842, %v2757_v50  }
 0x1ec   : > { %4147 = vmatmul.mubr.msk.f32.gmra.mrb[16].mxu0 %vm330_vm10, %v4129_v51  ;;  %v2758_v51 = vld [vmem:[%s6256_s3 + $0x48] sm:$0xff] }
 0x1ed   : > { %1828 = vmatprep.mubr.f32.mxu0 %v4853_v1  ;;  %2812 = vperm.xlu0 %4841, %v2758_v51  }
 0x1ee   : > { %4004 = vmatmul.mubr.msk.f32.gmra.mrb[4].mxu1 %vm330_vm10, %v272_v52  ;;  %v4193_v52 = vld [vmem:[%s6255_s2 + $0x3a0] sm:$0xff] }
 0x1ef   : > { %681 = vmatprep.mubr.f32.mxu1 %v4853_v1 }
 0x1f0   : > { %4148 = vmatmul.mubr.msk.f32.gmra.mrb[18].mxu0 %vm330_vm10, %v4130_v53  ;;  %v2759_v53 = vld [vmem:[%s6256_s3 + $0x50] sm:$0xff] }
 0x1f1   : > { %1834 = vmatprep.mubr.f32.mxu0 %v4853_v1  ;;  %2817 = vperm.xlu1 %4842, %v2759_v53  }
 0x1f2   : > { %4005 = vmatmul.mubr.msk.f32.gmra.mrb[6].mxu1 %vm330_vm10, %v273_v54  ;;  %v2760_v54 = vld [vmem:[%s6256_s3 + $0x58] sm:$0xff] }
 0x1f3   : > { %687 = vmatprep.mubr.f32.mxu1 %v4853_v1  ;;  %2822 = vperm.xlu0 %4841, %v2760_v54  }
 0x1f4   : > { %4149 = vmatmul.mubr.msk.f32.gmra.mrb[20].mxu0 %vm330_vm10, %v4131_v55  ;;  %v4194_v55 = vld [vmem:[%s6255_s2 + $0x3a8] sm:$0xff] }
 0x1f5   : > { %1840 = vmatprep.mubr.f32.mxu0 %v4853_v1 }
 0x1f6   : > { %4006 = vmatmul.mubr.msk.f32.gmra.mrb[8].mxu1 %vm330_vm10, %v274_v56  ;;  %v2761_v56 = vld [vmem:[%s6256_s3 + $0x60] sm:$0xff] }
 0x1f7   : > { %693 = vmatprep.mubr.f32.mxu1 %v4853_v1  ;;  %2827 = vperm.xlu1 %4842, %v2761_v56  }
 0x1f8   : > { %4150 = vmatmul.mubr.msk.f32.gmra.mrb[22].mxu0 %vm330_vm10, %v4132_v57  ;;  %v2762_v57 = vld [vmem:[%s6256_s3 + $0x68] sm:$0xff] }
 0x1f9   : > { %1846 = vmatprep.mubr.f32.mxu0 %v4853_v1  ;;  %2832 = vperm.xlu0 %4841, %v2762_v57  }
 0x1fa   : > { %4007 = vmatmul.mubr.msk.f32.gmra.mrb[10].mxu1 %vm330_vm10, %v275_v58  ;;  %v4195_v58 = vld [vmem:[%s6255_s2 + $0x3b0] sm:$0xff] }
 0x1fb   : > { %699 = vmatprep.mubr.f32.mxu1 %v4853_v1 }
 0x1fc   : > { %4151 = vmatmul.mubr.msk.f32.gmra.mrb[24].mxu0 %vm330_vm10, %v4133_v59  ;;  %v2763_v59 = vld [vmem:[%s6256_s3 + $0x70] sm:$0xff] }
 0x1fd   : > { %1852 = vmatprep.mubr.f32.mxu0 %v4853_v1  ;;  %2837 = vperm.xlu1 %4842, %v2763_v59  }
 0x1fe   : > { %4008 = vmatmul.mubr.msk.f32.gmra.mrb[12].mxu1 %vm330_vm10, %v276_v60  ;;  %v2764_v60 = vld [vmem:[%s6256_s3 + $0x78] sm:$0xff] }
 0x1ff   : > { %705 = vmatprep.mubr.f32.mxu1 %v4853_v1  ;;  %2842 = vperm.xlu0 %4841, %v2764_v60  }
 0x200   : > { %4152 = vmatmul.mubr.msk.f32.gmra.mrb[26].mxu0 %vm330_vm10, %v4134_v61  ;;  %v4196_v61 = vld [vmem:[%s6255_s2 + $0x3b8] sm:$0xff] }
 0x201   : > { %1858 = vmatprep.mubr.f32.mxu0 %v4853_v1 }
 0x202   : > { %4009 = vmatmul.mubr.msk.f32.gmra.mrb[14].mxu1 %vm330_vm10, %v277_v62  ;;  %v4197_v62 = vld [vmem:[%s6255_s2 + $0x3c0] sm:$0xff] }
 0x203   : > { %711 = vmatprep.mubr.f32.mxu1 %v4853_v1 }
 0x204   : > { %4153 = vmatmul.mubr.msk.f32.gmra.mrb[28].mxu0 %vm330_vm10, %v4135_v63  ;;  %v4198_v63 = vld [vmem:[%s6255_s2 + $0x3c8] sm:$0xff] }
 0x205   : > { %1864 = vmatprep.mubr.f32.mxu0 %v4853_v1 }
 0x206   : > { %4010 = vmatmul.mubr.msk.f32.gmra.mrb[16].mxu1 %vm330_vm10, %v278_v0  ;;  %v4199_v0 = vld [vmem:[%s6255_s2 + $0x3d0] sm:$0xff] }
 0x207   : > { %717 = vmatprep.mubr.f32.mxu1 %v4853_v1 }
 0x208   : > { %4154 = vmatmul.mubr.msk.f32.gmra.mrb[30].mxu0 %vm330_vm10, %v4136_v3  ;;  %v4200_v3 = vld [vmem:[%s6255_s2 + $0x3d8] sm:$0xff] }
 0x209   : > { %2059 = vmatprep.mubr.f32.mxu0 %v4853_v1 }
 0x20a   : > { %4011 = vmatmul.mubr.msk.f32.gmra.mrb[18].mxu1 %vm330_vm10, %v279_v7  ;;  %v4201_v7 = vld [vmem:[%s6255_s2 + $0x3e0] sm:$0xff] }
 0x20b   : > { %723 = vmatprep.mubr.f32.mxu1 %v4853_v1 }
 0x20c   : > { %4173 = vmatmul.mubr.msk.f32.vlgmr.msra.gmra.mrb[0].mxu0 %vm330_vm10, %v4155_v9  ;;  %v4203_v9 = vld [vmem:[%s6255_s2 + $0x3f0] sm:$0xff] }
 0x20d   : > { %4206 = vmatpush1.msk.msra.mxu0 %vm379_vm9, %v2217_v11  ;;  %2065 = vmatprep.mubr.f32.mxu0 %v4853_v1  ;;  %v4223_v11 = vld [vmem:[%s6255_s2 + $0x400] sm:$0xff] }
 0x20e   : > { %4012 = vmatmul.mubr.msk.f32.gmra.mrb[20].mxu1 %vm330_vm10, %v280_v10  ;;  %v2500_v4 = vpop.permute.xlu0 %2499  ;;  %v4204_v10 = vld [vmem:[%s6255_s2 + $0x3f8] sm:$0xff] }
 0x20f   : > { %729 = vmatprep.mubr.f32.mxu1 %v4853_v1 }
 0x210   : > { %4174 = vmatmul.mubr.msk.f32.gmra.mrb[2].mxu0 %vm330_vm10, %v4156_v12  ;;  %v4224_v12 = vld [vmem:[%s6255_s2 + $0x408] sm:$0xff] }
 0x211   : > { %v5529_v24 = vpop.permute.xlu1 %2497  ;;  %2071 = vmatprep.mubr.f32.mxu0 %v4853_v1 }
 0x212   : > { %v2503_v16 = vsel %vm2501_vm0, %v5529_v24, %v2500_v4  ;;  %4013 = vmatmul.mubr.msk.f32.gmra.mrb[22].mxu1 %vm330_vm10, %v281_v13  ;;  %v4225_v13 = vld [vmem:[%s6255_s2 + $0x410] sm:$0xff]  ;;  %v4226_v4 = vld [vmem:[%s6255_s2 + $0x418] sm:$0xff] }
 0x213   : > { %4239 = vmatprep.subr.msk.mxu0 %vm379_vm9, %v2503_v16  ;;  %735 = vmatprep.mubr.f32.mxu1 %v4853_v1  ;;  %v4229_v16 = vld [vmem:[%s6255_s2 + $0x430] sm:$0xff] }
 0x214   : > { %4175 = vmatmul.mubr.msk.f32.gmra.mrb[4].mxu0 %vm330_vm10, %v4157_v14  ;;  %v4228_v14 = vld [vmem:[%s6255_s2 + $0x428] sm:$0xff] }
 0x215   : > { %2077 = vmatprep.mubr.f32.mxu0 %v4853_v1  ;;  %v2496_v37 = vpop.permute.xlu1 %2495 }
 0x216   : > { %4014 = vmatmul.mubr.msk.f32.gmra.mrb[24].mxu1 %vm330_vm10, %v282_v17  ;;  %v2502_v41 = vsel %vm2501_vm0, %v2496_v37, %v5529_v24  ;;  %v4227_v24 = vld [vmem:[%s6255_s2 + $0x420] sm:$0xff]  ;;  %v4230_v17 = vld [vmem:[%s6255_s2 + $0x438] sm:$0xff] }
 0x217   : > { %741 = vmatprep.mubr.f32.mxu1 %v4853_v1 }
 0x218   : > { %4176 = vmatmul.mubr.msk.f32.gmra.mrb[6].mxu0 %vm330_vm10, %v4158_v18  ;;  %v4231_v18 = vld [vmem:[%s6255_s2 + $0x440] sm:$0xff] }
 0x219   : > { %2083 = vmatprep.mubr.f32.mxu0 %v4853_v1 }
 0x21a   : > { %4015 = vmatmul.mubr.msk.f32.gmra.mrb[26].mxu1 %vm330_vm10, %v283_v19  ;;  %v4232_v19 = vld [vmem:[%s6255_s2 + $0x448] sm:$0xff] }
 0x21b   : > { %747 = vmatprep.mubr.f32.mxu1 %v4853_v1 }
 0x21c   : > { %4177 = vmatmul.mubr.msk.f32.gmra.mrb[8].mxu0 %vm330_vm10, %v4159_v20  ;;  %v4233_v20 = vld [vmem:[%s6255_s2 + $0x450] sm:$0xff] }
 0x21d   : > { %2089 = vmatprep.mubr.f32.mxu0 %v4853_v1 }
 0x21e   : > { %4016 = vmatmul.mubr.msk.f32.gmra.mrb[28].mxu1 %vm330_vm10, %v284_v21  ;;  %v4234_v21 = vld [vmem:[%s6255_s2 + $0x458] sm:$0xff] }
 0x21f   : > { %753 = vmatprep.mubr.f32.mxu1 %v4853_v1 }
 0x220   : > { %4178 = vmatmul.mubr.msk.f32.gmra.mrb[10].mxu0 %vm330_vm10, %v4160_v22  ;;  %v4235_v22 = vld [vmem:[%s6255_s2 + $0x460] sm:$0xff] }
 0x221   : > { %2095 = vmatprep.mubr.f32.mxu0 %v4853_v1 }
 0x222   : > { %4017 = vmatmul.mubr.msk.f32.gmra.mrb[30].mxu1 %vm330_vm10, %v285_v23 }
 0x223   : > { %2974 = vmatprep.mubr.f32.mxu1 %v4853_v1 }
 0x224   : > { %4179 = vmatmul.mubr.msk.f32.gmra.mrb[12].mxu0 %vm330_vm10, %v4161_v25 }
 0x225   : > { %2101 = vmatprep.mubr.f32.mxu0 %v4853_v1 }
 0x228   : > { %4180 = vmatmul.mubr.msk.f32.gmra.mrb[14].mxu0 %vm330_vm10, %v4162_v26  ;;  %v4236_v26 = vld [vmem:[%s6255_s2 + $0x468] sm:$0xff] }
 0x229   : > { %2107 = vmatprep.mubr.f32.mxu0 %v4853_v1 }
 0x22c   : > { %4181 = vmatmul.mubr.msk.f32.gmra.mrb[16].mxu0 %vm330_vm10, %v4163_v27 }
 0x22d   : > { %2113 = vmatprep.mubr.f32.mxu0 %v4853_v1 }
 0x230   : > { %4182 = vmatmul.mubr.msk.f32.gmra.mrb[18].mxu0 %vm330_vm10, %v4164_v28 }
 0x231   : > { %2119 = vmatprep.mubr.f32.mxu0 %v4853_v1 }
 0x234   : > { %4183 = vmatmul.mubr.msk.f32.gmra.mrb[20].mxu0 %vm330_vm10, %v4165_v29  ;;  %v4237_v29 = vld [vmem:[%s6255_s2 + $0x470] sm:$0xff] }
 0x235   : > { %2125 = vmatprep.mubr.f32.mxu0 %v4853_v1 }
 0x238   : > { %4184 = vmatmul.mubr.msk.f32.gmra.mrb[22].mxu0 %vm330_vm10, %v4166_v30 }
 0x239   : > { %2131 = vmatprep.mubr.f32.mxu0 %v4853_v1 }
 0x23c   : > { %4185 = vmatmul.mubr.msk.f32.gmra.mrb[24].mxu0 %vm330_vm10, %v4167_v31 }
 0x23d   : > { %2137 = vmatprep.mubr.f32.mxu0 %v4853_v1 }
 0x240   : > { %4186 = vmatmul.mubr.msk.f32.gmra.mrb[26].mxu0 %vm330_vm10, %v4168_v32  ;;  %v4238_v32 = vld [vmem:[%s6255_s2 + $0x478] sm:$0xff] }
 0x241   : > { %2143 = vmatprep.mubr.f32.mxu0 %v4853_v1 }
 0x244   : > { %4187 = vmatmul.mubr.msk.f32.gmra.mrb[28].mxu0 %vm330_vm10, %v4169_v33 }
 0x245   : > { %2149 = vmatprep.mubr.f32.mxu0 %v4853_v1 }
 0x248   : > { %4188 = vmatmul.mubr.msk.f32.gmra.mrb[30].mxu0 %vm330_vm10, %v4170_v34 }
 0x249   : > { %2335 = vmatprep.mubr.f32.mxu0 %v4853_v1 }
 0x24c   : > { %4207 = vmatmul.mubr.msk.f32.vlgmr.msra.gmra.mrb[0].mxu0 %vm330_vm10, %v4189_v38 }
 0x24d   : > { %4240 = vmatpush1.msk.msra.mxu0 %vm379_vm9, %v2502_v41  ;;  %2341 = vmatprep.mubr.f32.mxu0 %v4853_v1 }
 0x250   : > { %4208 = vmatmul.mubr.msk.f32.gmra.mrb[2].mxu0 %vm330_vm10, %v4190_v43 }
 0x251   : > { %2347 = vmatprep.mubr.f32.mxu0 %v4853_v1 }
 0x254   : > { %4209 = vmatmul.mubr.msk.f32.gmra.mrb[4].mxu0 %vm330_vm10, %v4191_v46 }
 0x255   : > { %2353 = vmatprep.mubr.f32.mxu0 %v4853_v1 }
 0x258   : > { %4210 = vmatmul.mubr.msk.f32.gmra.mrb[6].mxu0 %vm330_vm10, %v4192_v49 }
 0x259   : > { %2359 = vmatprep.mubr.f32.mxu0 %v4853_v1 }
 0x25c   : > { %4211 = vmatmul.mubr.msk.f32.gmra.mrb[8].mxu0 %vm330_vm10, %v4193_v52 }
 0x25d   : > { %2365 = vmatprep.mubr.f32.mxu0 %v4853_v1 }
 0x260   : > { %4212 = vmatmul.mubr.msk.f32.gmra.mrb[10].mxu0 %vm330_vm10, %v4194_v55 }
 0x261   : > { %2371 = vmatprep.mubr.f32.mxu0 %v4853_v1 }
 0x264   : > { %4213 = vmatmul.mubr.msk.f32.gmra.mrb[12].mxu0 %vm330_vm10, %v4195_v58 }
 0x265   : > { %2377 = vmatprep.mubr.f32.mxu0 %v4853_v1 }
 0x268   : > { %4214 = vmatmul.mubr.msk.f32.gmra.mrb[14].mxu0 %vm330_vm10, %v4196_v61 }
 0x269   : > { %2383 = vmatprep.mubr.f32.mxu0 %v4853_v1 }
 0x26c   : > { %4215 = vmatmul.mubr.msk.f32.gmra.mrb[16].mxu0 %vm330_vm10, %v4197_v62  ;;  %v2768_v62 = vpop.permute.xlu0 %2767 }
 0x26d   : > { %2389 = vmatprep.mubr.f32.mxu0 %v4853_v1 }
 0x270   : > { %4216 = vmatmul.mubr.msk.f32.gmra.mrb[18].mxu0 %vm330_vm10, %v4198_v63 }
 0x271   : > { %2395 = vmatprep.mubr.f32.mxu0 %v4853_v1 }
 0x274   : > { %4217 = vmatmul.mubr.msk.f32.gmra.mrb[20].mxu0 %vm330_vm10, %v4199_v0  ;;  %v2773_v0 = vpop.permute.xlu1 %2772 }
 0x275   : > { %2401 = vmatprep.mubr.f32.mxu0 %v4853_v1 }
 0x278   : > { %4218 = vmatmul.mubr.msk.f32.gmra.mrb[22].mxu0 %vm330_vm10, %v4200_v3 }
 0x279   : > { %2407 = vmatprep.mubr.f32.mxu0 %v4853_v1 }
 0x27c   : > { %4219 = vmatmul.mubr.msk.f32.gmra.mrb[24].mxu0 %vm330_vm10, %v4201_v7 }
 0x27d   : > { %2413 = vmatprep.mubr.f32.mxu0 %v4853_v1 }
 0x280   : > { %4220 = vmatmul.mubr.msk.f32.gmra.mrb[26].mxu0 %vm330_vm10, %v4202_v8 }
 0x281   : > { %2419 = vmatprep.mubr.f32.mxu0 %v4853_v1 }
 0x284   : > { %4221 = vmatmul.mubr.msk.f32.gmra.mrb[28].mxu0 %vm330_vm10, %v4203_v9 }
 0x285   : > { %2425 = vmatprep.mubr.f32.mxu0 %v4853_v1 }
 0x288   : > { %4222 = vmatmul.mubr.msk.f32.gmra.mrb[30].mxu0 %vm330_vm10, %v4204_v10 }
 0x289   : > { %2620 = vmatprep.mubr.f32.mxu0 %v4853_v1 }
 0x28c   : > { %4241 = vmatmul.mubr.msk.f32.vlgmr.msra.gmra.mrb[0].mxu0 %vm330_vm10, %v4223_v11 }
 0x28d   : > { %2626 = vmatprep.mubr.f32.mxu0 %v4853_v1 }
 0x290   : > { %4242 = vmatmul.mubr.msk.f32.gmra.mrb[2].mxu0 %vm330_vm10, %v4224_v12 }
 0x291   : > { %2632 = vmatprep.mubr.f32.mxu0 %v4853_v1 }
 0x294   : > { %4243 = vmatmul.mubr.msk.f32.gmra.mrb[4].mxu0 %vm330_vm10, %v4225_v13 }
 0x295   : > { %2638 = vmatprep.mubr.f32.mxu0 %v4853_v1 }
 0x298   : > { %4244 = vmatmul.mubr.msk.f32.gmra.mrb[6].mxu0 %vm330_vm10, %v4226_v4 }
 0x299   : > { %2644 = vmatprep.mubr.f32.mxu0 %v4853_v1 }
 0x29c   : > { %4245 = vmatmul.mubr.msk.f32.gmra.mrb[8].mxu0 %vm330_vm10, %v4227_v24 }
 0x29d   : > { %2650 = vmatprep.mubr.f32.mxu0 %v4853_v1 }
 0x2a0   : > { %4246 = vmatmul.mubr.msk.f32.gmra.mrb[10].mxu0 %vm330_vm10, %v4228_v14 }
 0x2a1   : > { %2656 = vmatprep.mubr.f32.mxu0 %v4853_v1 }
 0x2a4   : > { %4247 = vmatmul.mubr.msk.f32.gmra.mrb[12].mxu0 %vm330_vm10, %v4229_v16 }
 0x2a5   : > { %2662 = vmatprep.mubr.f32.mxu0 %v4853_v1 }
 0x2a8   : > { %4248 = vmatmul.mubr.msk.f32.gmra.mrb[14].mxu0 %vm330_vm10, %v4230_v17 }
 0x2a9   : > { %2668 = vmatprep.mubr.f32.mxu0 %v4853_v1 }
 0x2ac   : > { %4249 = vmatmul.mubr.msk.f32.gmra.mrb[16].mxu0 %vm330_vm10, %v4231_v18  ;;  %v2778_v18 = vpop.permute.xlu1 %2777 }
 0x2ad   : > { %2674 = vmatprep.mubr.f32.mxu0 %v4853_v1 }
 0x2b0   : > { %4250 = vmatmul.mubr.msk.f32.gmra.mrb[18].mxu0 %vm330_vm10, %v4232_v19 }
 0x2b1   : > { %2680 = vmatprep.mubr.f32.mxu0 %v4853_v1 }
 0x2b4   : > { %4251 = vmatmul.mubr.msk.f32.gmra.mrb[20].mxu0 %vm330_vm10, %v4233_v20 }
 0x2b5   : > { %2686 = vmatprep.mubr.f32.mxu0 %v4853_v1 }
 0x2b8   : > { %4252 = vmatmul.mubr.msk.f32.gmra.mrb[22].mxu0 %vm330_vm10, %v4234_v21 }
 0x2b9   : > { %2692 = vmatprep.mubr.f32.mxu0 %v4853_v1  ;;  %v665_v23 = vpop.f32.mrb[0].mxu1 }
 0x2ba   : > { %v667_v25 = vpop.f32.mrb[1].mxu1 }
 0x2bc   : > { %4253 = vmatmul.mubr.msk.f32.gmra.mrb[24].mxu0 %vm330_vm10, %v4235_v22 }
 0x2bd   : > { %2698 = vmatprep.mubr.f32.mxu0 %v4853_v1  ;;  %v671_v27 = vpop.f32.mrb[2].mxu1 }
 0x2be   : > { %v673_v28 = vpop.f32.mrb[3].mxu1 }
 0x2c0   : > { %4254 = vmatmul.mubr.msk.f32.gmra.mrb[26].mxu0 %vm330_vm10, %v4236_v26 }
 0x2c1   : > { %2704 = vmatprep.mubr.f32.mxu0 %v4853_v1  ;;  %v677_v30 = vpop.f32.mrb[4].mxu1 }
 0x2c2   : > { %v679_v31 = vpop.f32.mrb[5].mxu1 }
 0x2c4   : > { %4255 = vmatmul.mubr.msk.f32.gmra.mrb[28].mxu0 %vm330_vm10, %v4237_v29 }
 0x2c5   : > { %2710 = vmatprep.mubr.f32.mxu0 %v4853_v1  ;;  %v683_v33 = vpop.f32.mrb[6].mxu1 }
 0x2c6   : > { %v685_v34 = vpop.f32.mrb[7].mxu1 }
 0x2c8   : > { %4256 = vmatmul.mubr.msk.f32.gmra.mrb[30].mxu0 %vm330_vm10, %v4238_v32 }
 0x2c9   : > { %v5837_v35 = vpop.f32.mrb[8].mxu1 }
 0x2ca   : > { %v5839_v36 = vpop.f32.mrb[9].mxu1 }
 0x2cd   : > { %v5841_v37 = vpop.f32.mrb[10].mxu1 }
 0x2ce   : > { %v5843_v38 = vpop.f32.mrb[11].mxu1 }
 0x2d1   : > { %v5845_v39 = vpop.f32.mrb[12].mxu1 }
 0x2d2   : > { %v5847_v40 = vpop.f32.mrb[13].mxu1 }
 0x2d5   : > { %v5849_v41 = vpop.f32.mrb[14].mxu1 }
 0x2d6   : > { %v5851_v42 = vpop.f32.mrb[15].mxu1 }
 0x2d9   : > { %v5853_v43 = vpop.f32.mrb[16].mxu1 }
 0x2da   : > { %v5855_v44 = vpop.f32.mrb[17].mxu1 }
 0x2dd   : > { %v5857_v45 = vpop.f32.mrb[18].mxu1 }
 0x2de   : > { %v5859_v46 = vpop.f32.mrb[19].mxu1 }
 0x2e1   : > { %v5861_v47 = vpop.f32.mrb[20].mxu1 }
 0x2e2   : > { %v5863_v48 = vpop.f32.mrb[21].mxu1 }
 0x2e5   : > { %v5865_v49 = vpop.f32.mrb[22].mxu1 }
 0x2e6   : > { %v5867_v50 = vpop.f32.mrb[23].mxu1 }
 0x2e9   : > { %v5869_v51 = vpop.f32.mrb[24].mxu1 }
 0x2ea   : > { %v5871_v52 = vpop.f32.mrb[25].mxu1 }
 0x2ed   : > { %v5873_v53 = vpop.f32.mrb[26].mxu1 }
 0x2ee   : > { %v5875_v54 = vpop.f32.mrb[27].mxu1 }
 0x2f1   : > { %v5877_v55 = vpop.f32.mrb[28].mxu1 }
 0x2f2   : > { %v5879_v56 = vpop.f32.mrb[29].mxu1 }
 0x2f5   : > { %v5881_v57 = vpop.f32.mrb[30].mxu1 }
 0x2f6   : > { %v5883_v58 = vpop.f32.mrb[31].mxu1 }
 0x35f   : > { %v2622_v59 = vpop.f32.mrb[0].mxu0 }
 0x360   : > { %v4560_v60 = vadd.f32 %v2622_v59, %v665_v23  ;;  %v2624_v61 = vpop.f32.mrb[1].mxu0 }
 0x361   : > { %v4561_v63 = vadd.f32 %v2624_v61, %v667_v25 }
 0x362   : > { %v2845_v7 = vadd.f32 %v4560_v60, %v2768_v62 }
 0x363   : > { %v2628_v3 = vpop.f32.mrb[2].mxu0  ;;  %v2846_v10 = vadd.f32 %v4561_v63, %v2768_v62 }
 0x364   : > { %v4562_v8 = vadd.f32 %v2628_v3, %v671_v27  ;;  %v2630_v9 = vpop.f32.mrb[3].mxu0  ;;  %v2877_v24 = vmax.f32 %v2845_v7, 0.0 }
 0x365   : > { %v4563_v11 = vadd.f32 %v2630_v9, %v673_v28  ;;  %v2878_v19 = vmax.f32 %v2846_v10, 0.0  ;;  %v2783_v28 = vpop.permute.xlu0 %2782  ;;  %v2788_v9 = vpop.permute.xlu1 %2787 }
 0x366   : > { %v2847_v12 = vadd.f32 %v4562_v8, %v2773_v0 }
 0x367   : > { %v2848_v13 = vadd.f32 %v4563_v11, %v2773_v0  ;;  %v2634_v4 = vpop.f32.mrb[4].mxu0 }
 0x368   : > { %v2879_v14 = vmax.f32 %v2847_v12, 0.0  ;;  %v4564_v16 = vadd.f32 %v2634_v4, %v677_v30  ;;  %v2636_v17 = vpop.f32.mrb[5].mxu0 }
 0x369   : > { %v2880_v20 = vmax.f32 %v2848_v13, 0.0  ;;  %v4565_v21 = vadd.f32 %v2636_v17, %v679_v31  ;;  %v2793_v4 = vpop.permute.xlu0 %2792 }
 0x36a   : > { %v5885_v22 = vpack.c.bf16 %v2879_v14, %v2877_v24  ;;  %v2849_v26 = vadd.f32 %v4564_v16, %v2778_v18 }
 0x36b   : > { %v5887_v23 = vpack.c.bf16 %v2880_v20, %v2878_v19  ;;  %v2640_v25 = vpop.f32.mrb[6].mxu0  ;;  %v2850_v32 = vadd.f32 %v4565_v21, %v2778_v18 }
 0x36c   : > { %v4566_v27 = vadd.f32 %v2640_v25, %v683_v33  ;;  %v2642_v29 = vpop.f32.mrb[7].mxu0  ;;  %v2881_v62 = vmax.f32 %v2849_v26, 0.0 }
 0x36d   : > { %v4567_v59 = vadd.f32 %v2642_v29, %v685_v34  ;;  %4273 = vmatprep.subr.bf16.mxu1 %v5887_v23  ;;  %v2882_v3 = vmax.f32 %v2850_v32, 0.0 }
 0x36e   : > { %v2851_v60 = vadd.f32 %v4566_v27, %v2783_v28  ;;  %4275 = vmatpush1.bf16.msra.mxu1 %v5885_v22  ;;  %v2798_v27 = vpop.permute.xlu1 %2797 }
 0x36f   : > { %v2852_v30 = vadd.f32 %v4567_v59, %v2783_v28  ;;  %v2646_v61 = vpop.f32.mrb[8].mxu0 }
 0x370   : > { %v2883_v31 = vmax.f32 %v2851_v60, 0.0  ;;  %v4568_v63 = vadd.f32 %v2646_v61, %v5837_v35  ;;  %v2648_v0 = vpop.f32.mrb[9].mxu0  ;;  %v2803_v60 = vpop.permute.xlu0 %2802 }
 0x371   : > { %v2884_v7 = vmax.f32 %v2852_v30, 0.0  ;;  %v4569_v33 = vadd.f32 %v2648_v0, %v5839_v36 }
 0x372   : > { %v5893_v8 = vpack.c.bf16 %v2883_v31, %v2881_v62  ;;  %v2853_v11 = vadd.f32 %v4568_v63, %v2788_v9 }
 0x373   : > { %v5895_v34 = vpack.c.bf16 %v2884_v7, %v2882_v3  ;;  %v2652_v10 = vpop.f32.mrb[10].mxu0  ;;  %v2854_v24 = vadd.f32 %v4569_v33, %v2788_v9 }
 0x374   : > { %v4570_v12 = vadd.f32 %v2652_v10, %v5841_v37  ;;  %v2654_v13 = vpop.f32.mrb[11].mxu0  ;;  %v2885_v17 = vmax.f32 %v2853_v11, 0.0  ;;  %v2808_v10 = vpop.permute.xlu1 %2807 }
 0x375   : > { %v4571_v14 = vadd.f32 %v2654_v13, %v5843_v38  ;;  %4277 = vmatprep.subr.bf16.mxu1 %v5895_v34  ;;  %v2886_v21 = vmax.f32 %v2854_v24, 0.0  ;;  %v2813_v24 = vpop.permute.xlu0 %2812 }
 0x376   : > { %v2855_v35 = vadd.f32 %v4570_v12, %v2793_v4  ;;  %4279 = vmatpush1.bf16.msra.mxu1 %v5893_v8 }
 0x377   : > { %v2856_v36 = vadd.f32 %v4571_v14, %v2793_v4  ;;  %v2658_v16 = vpop.f32.mrb[12].mxu0 }
 0x378   : > { %v2887_v18 = vmax.f32 %v2855_v35, 0.0  ;;  %v4572_v19 = vadd.f32 %v2658_v16, %v5845_v39  ;;  %v2660_v20 = vpop.f32.mrb[13].mxu0 }
 0x379   : > { %v2888_v25 = vmax.f32 %v2856_v36, 0.0  ;;  %v4573_v37 = vadd.f32 %v2660_v20, %v5847_v40 }
 0x37a   : > { %v5903_v26 = vpack.c.bf16 %v2887_v18, %v2885_v17  ;;  %v2857_v28 = vadd.f32 %v4572_v19, %v2798_v27 }
 0x37b   : > { %v5905_v38 = vpack.c.bf16 %v2888_v25, %v2886_v21  ;;  %v2664_v29 = vpop.f32.mrb[14].mxu0  ;;  %v2858_v30 = vadd.f32 %v4573_v37, %v2798_v27  ;;  %v2818_v37 = vpop.permute.xlu1 %2817 }
 0x37c   : > { %v4574_v32 = vadd.f32 %v2664_v29, %v5849_v41  ;;  %v2666_v59 = vpop.f32.mrb[15].mxu0  ;;  %v2889_v31 = vmax.f32 %v2857_v28, 0.0 }
 0x37d   : > { %v4575_v61 = vadd.f32 %v2666_v59, %v5851_v42  ;;  %4281 = vmatprep.subr.bf16.mxu1 %v5905_v38  ;;  %v2890_v7 = vmax.f32 %v2858_v30, 0.0  ;;  %v2823_v59 = vpop.permute.xlu0 %2822 }
 0x37e   : > { %v2859_v39 = vadd.f32 %v4574_v32, %v2803_v60  ;;  %4283 = vmatpush1.bf16.msra.mxu1 %v5903_v26 }
 0x37f   : > { %v2860_v40 = vadd.f32 %v4575_v61, %v2803_v60  ;;  %v2670_v62 = vpop.f32.mrb[16].mxu0 }
 0x380   : > { %v2891_v63 = vmax.f32 %v2859_v39, 0.0  ;;  %v4576_v0 = vadd.f32 %v2670_v62, %v5853_v43  ;;  %v2672_v3 = vpop.f32.mrb[17].mxu0 }
 0x381   : > { %v2892_v33 = vmax.f32 %v2860_v40, 0.0  ;;  %v4577_v41 = vadd.f32 %v2672_v3, %v5855_v44 }
 0x382   : > { %v5913_v9 = vpack.c.bf16 %v2891_v63, %v2889_v31  ;;  %v2861_v12 = vadd.f32 %v4576_v0, %v2808_v10 }
 0x383   : > { %v5915_v42 = vpack.c.bf16 %v2892_v33, %v2890_v7  ;;  %v2676_v11 = vpop.f32.mrb[18].mxu0  ;;  %v2862_v14 = vadd.f32 %v4577_v41, %v2808_v10  ;;  %v2828_v7 = vpop.permute.xlu1 %2827 }
 0x384   : > { %v4578_v13 = vadd.f32 %v2676_v11, %v5857_v45  ;;  %v2678_v4 = vpop.f32.mrb[19].mxu0  ;;  %v2893_v16 = vmax.f32 %v2861_v12, 0.0  ;;  %v2833_v12 = vpop.permute.xlu0 %2832 }
 0x385   : > { %v4579_v35 = vadd.f32 %v2678_v4, %v5859_v46  ;;  %4285 = vmatprep.subr.bf16.mxu1 %v5915_v42  ;;  %v2894_v20 = vmax.f32 %v2862_v14, 0.0 }
 0x386   : > { %v2863_v43 = vadd.f32 %v4578_v13, %v2813_v24  ;;  %4287 = vmatpush1.bf16.msra.mxu1 %v5913_v9 }
 0x387   : > { %v2864_v44 = vadd.f32 %v4579_v35, %v2813_v24  ;;  %v2682_v36 = vpop.f32.mrb[20].mxu0 }
 0x388   : > { %v2895_v17 = vmax.f32 %v2863_v43, 0.0  ;;  %v4580_v18 = vadd.f32 %v2682_v36, %v5861_v47  ;;  %v2684_v19 = vpop.f32.mrb[21].mxu0 }
 0x389   : > { %v2896_v21 = vmax.f32 %v2864_v44, 0.0  ;;  %v4581_v45 = vadd.f32 %v2684_v19, %v5863_v48 }
 0x38a   : > { %v5923_v25 = vpack.c.bf16 %v2895_v17, %v2893_v16  ;;  %v2865_v29 = vadd.f32 %v4580_v18, %v2818_v37  ;;  %v2838_v18 = vpop.permute.xlu1 %2837 }
 0x38b   : > { %v5925_v46 = vpack.c.bf16 %v2896_v21, %v2894_v20  ;;  %v2688_v27 = vpop.f32.mrb[22].mxu0  ;;  %v2866_v60 = vadd.f32 %v4581_v45, %v2818_v37  ;;  %v2843_v37 = vpop.permute.xlu0 %2842 }
 0x38c   : > { %v4582_v28 = vadd.f32 %v2688_v27, %v5865_v49  ;;  %v2690_v32 = vpop.f32.mrb[23].mxu0  ;;  %v2897_v39 = vmax.f32 %v2865_v29, 0.0 }
 0x38d   : > { %v4583_v30 = vadd.f32 %v2690_v32, %v5867_v50  ;;  %4289 = vmatprep.subr.bf16.mxu1 %v5925_v46  ;;  %v2898_v63 = vmax.f32 %v2866_v60, 0.0 }
 0x38e   : > { %v2867_v47 = vadd.f32 %v4582_v28, %v2823_v59  ;;  %4291 = vmatpush1.bf16.msra.mxu1 %v5923_v25 }
 0x38f   : > { %v2868_v48 = vadd.f32 %v4583_v30, %v2823_v59  ;;  %v2694_v61 = vpop.f32.mrb[24].mxu0 }
 0x390   : > { %v2899_v40 = vmax.f32 %v2867_v47, 0.0  ;;  %v4584_v62 = vadd.f32 %v2694_v61, %v5869_v51  ;;  %v2696_v31 = vpop.f32.mrb[25].mxu0  ;;  %v4260_v61 = vld [vmem:[%s6257_s4 + $0xc] sm:$0xf] }
 0x391   : > { %v2900_v0 = vmax.f32 %v2868_v48, 0.0  ;;  %v4585_v49 = vadd.f32 %v2696_v31, %v5871_v52  ;;  %v4258_v48 = vld [vmem:[%s6257_s4 + $0x8] sm:$0xf] }
 0x392   : > { %v5933_v3 = vpack.c.bf16 %v2899_v40, %v2897_v39  ;;  %v2869_v41 = vadd.f32 %v4584_v62, %v2828_v7  ;;  %v4261_v39 = vld [vmem:[%s6257_s4 + $0x10] sm:$0xf]  ;;  %v4262_v40 = vld [vmem:[%s6257_s4 + $0x14] sm:$0xf]  ;;  %v4264_v62 = vld [vmem:[%s6257_s4 + $0x18] sm:$0xf] }
 0x393   : > { %v5935_v50 = vpack.c.bf16 %v2900_v0, %v2898_v63  ;;  %v2700_v33 = vpop.f32.mrb[26].mxu0  ;;  %v2870_v13 = vadd.f32 %v4585_v49, %v2828_v7  ;;  %v4265_v49 = vld [vmem:[%s6257_s4 + $0x1c] sm:$0xf] }
 0x394   : > { %v4586_v10 = vadd.f32 %v2700_v33, %v5873_v53  ;;  %v2702_v11 = vpop.f32.mrb[27].mxu0  ;;  %v2901_v14 = vmax.f32 %v2869_v41, 0.0 }
 0x395   : > { %v4587_v4 = vadd.f32 %v2702_v11, %v5875_v54  ;;  %4293 = vmatprep.subr.bf16.mxu1 %v5935_v50  ;;  %v2902_v36 = vmax.f32 %v2870_v13, 0.0 }
 0x396   : > { %v2871_v51 = vadd.f32 %v4586_v10, %v2833_v12  ;;  %4295 = vmatpush1.bf16.msra.mxu1 %v5933_v3 }
 0x397   : > { %v2872_v52 = vadd.f32 %v4587_v4, %v2833_v12  ;;  %v2706_v24 = vpop.f32.mrb[28].mxu0 }
 0x398   : > { %v2903_v35 = vmax.f32 %v2871_v51, 0.0  ;;  %v4588_v43 = vadd.f32 %v2706_v24, %v5877_v55  ;;  %v2708_v44 = vpop.f32.mrb[29].mxu0 }
 0x399   : > { %v2904_v16 = vmax.f32 %v2872_v52, 0.0  ;;  %v4589_v53 = vadd.f32 %v2708_v44, %v5879_v56 }
 0x39a   : > { %v5943_v17 = vpack.c.bf16 %v2903_v35, %v2901_v14  ;;  %v2873_v20 = vadd.f32 %v4588_v43, %v2838_v18 }
 0x39b   : > { %v5945_v54 = vpack.c.bf16 %v2904_v16, %v2902_v36  ;;  %v2712_v19 = vpop.f32.mrb[30].mxu0  ;;  %v2874_v27 = vadd.f32 %v4589_v53, %v2838_v18  ;;  %v4259_v36 = vld [vmem:[%s6254_s1 + $0x1] ss:$2 sm:$0x3] }
 0x39c   : > { %v4590_v21 = vadd.f32 %v2712_v19, %v5881_v57  ;;  %v2714_v45 = vpop.f32.mrb[31].mxu0  ;;  %v2905_v28 = vmax.f32 %v2873_v20, 0.0  ;;  %v2909_v57 = vld [vmem:[%s6257_s4] sm:$0xf]  ;;  %v3196_v53 = vrot.slane %v4259_v36, %v4929_v5 }
 0x39d   : > { %v4591_v29 = vadd.f32 %v2714_v45, %v5883_v58  ;;  %4297 = vmatprep.subr.bf16.mxu1 %v5945_v54  ;;  %v2906_v59 = vmax.f32 %v2874_v27, 0.0  ;;  %v4257_v58 = vld [vmem:[%s6257_s4 + $0x4] sm:$0xf] }
 0x39e   : > { %v2875_v55 = vadd.f32 %v4590_v21, %v2843_v37  ;;  %4299 = vmatpush1.bf16.msra.mxu1 %v5943_v17 }
 0x39f   : > { %v2876_v56 = vadd.f32 %v4591_v29, %v2843_v37  ;;  %v3308_v29 = vld [vmem:[%s6254_s1] ss:$2 sm:$0x3] }
 0x3a0   : > { %v2907_v32 = vmax.f32 %v2875_v55, 0.0 }
 0x3a1   : > { %v2908_v60 = vmax.f32 %v2876_v56, 0.0  ;;  %v3313_v56 = vrot.slane %v3308_v29, %v4929_v5 }
 0x3a2   : > { %v5951_v30 = vpack.c.bf16 %v2907_v32, %v2905_v28  ;;  %v3317_v28 = vrot.slane %v3308_v29, %v4932_v6 }
 0x3a3   : > { %v5953_v47 = vpack.c.bf16 %v2908_v60, %v2906_v59  ;;  %v4263_v59 = vld [vmem:[%s6254_s1 + $0x1] ss:$2 sm:$0x3] }
 0x3a5   : > { %4301 = vmatprep.subr.bf16.mxu1 %v5953_v47 }
 0x3a6   : > { %4303 = vmatpush1.bf16.msra.mxu1 %v5951_v30 }
 0x3a7   : > { %4305 = vmatprep.subr.bf16.mxu1 %v5887_v23 }
 0x3a9   : > { %2975 = vmatmul.mubr.f32.vlgmr.msra.gmra.mrb[32].mxu1 %v2909_v57  ;;  %v3532_v57 = vrot.slane %v4263_v59, %v4932_v6 }
 0x3aa   : > { %4307 = vmatpush1.bf16.msra.mxu1 %v5885_v22  ;;  %3073 = vmatprep.mubr.f32.mxu1 %v4853_v1 }
 0x3ab   : > { %4309 = vmatprep.subr.bf16.mxu1 %v5895_v34 }
 0x3ae   : > { %4311 = vmatpush1.bf16.msra.mxu1 %v5893_v8 }
 0x3af   : > { %4313 = vmatprep.subr.bf16.mxu1 %v5905_v38 }
 0x3b2   : > { %4315 = vmatpush1.bf16.msra.mxu1 %v5903_v26 }
 0x3b3   : > { %4317 = vmatprep.subr.bf16.mxu1 %v5915_v42 }
 0x3b6   : > { %4319 = vmatpush1.bf16.msra.mxu1 %v5913_v9 }
 0x3b7   : > { %4321 = vmatprep.subr.bf16.mxu1 %v5925_v46 }
 0x3ba   : > { %4323 = vmatpush1.bf16.msra.mxu1 %v5923_v25 }
 0x3bb   : > { %4325 = vmatprep.subr.bf16.mxu1 %v5935_v50 }
 0x3be   : > { %4327 = vmatpush1.bf16.msra.mxu1 %v5933_v3 }
 0x3bf   : > { %4329 = vmatprep.subr.bf16.mxu1 %v5945_v54 }
 0x3c2   : > { %4331 = vmatpush1.bf16.msra.mxu1 %v5943_v17 }
 0x3c3   : > { %4333 = vmatprep.subr.bf16.mxu1 %v5953_v47 }
 0x3c6   : > { %4335 = vmatpush1.bf16.msra.mxu1 %v5951_v30 }
 0x3c7   : > { %4337 = vmatprep.subr.bf16.mxu1 %v5887_v23 }
 0x3c9   : > { %3074 = vmatmul.mubr.f32.vlgmr.msra.gmra.mrb[34].mxu1 %v4257_v58  ;;  %v4267_v58 = vld [vmem:[%s6254_s1 + $0x1] ss:$2 sm:$0x3] }
 0x3ca   : > { %4339 = vmatpush1.bf16.msra.mxu1 %v5885_v22  ;;  %3171 = vmatprep.mubr.f32.mxu1 %v4853_v1 }
 0x3cb   : > { %4341 = vmatprep.subr.bf16.mxu1 %v5895_v34 }
 0x3ce   : > { %4343 = vmatpush1.bf16.msra.mxu1 %v5893_v8 }
 0x3cf   : > { %4345 = vmatprep.subr.bf16.mxu1 %v5905_v38 }
 0x3d2   : > { %4347 = vmatpush1.bf16.msra.mxu1 %v5903_v26 }
 0x3d3   : > { %4349 = vmatprep.subr.bf16.mxu1 %v5915_v42 }
 0x3d6   : > { %4351 = vmatpush1.bf16.msra.mxu1 %v5913_v9 }
 0x3d7   : > { %4353 = vmatprep.subr.bf16.mxu1 %v5925_v46 }
 0x3da   : > { %4355 = vmatpush1.bf16.msra.mxu1 %v5923_v25 }
 0x3db   : > { %4357 = vmatprep.subr.bf16.mxu1 %v5935_v50 }
 0x3de   : > { %4359 = vmatpush1.bf16.msra.mxu1 %v5933_v3 }
 0x3df   : > { %4361 = vmatprep.subr.bf16.mxu1 %v5945_v54 }
 0x3e2   : > { %4363 = vmatpush1.bf16.msra.mxu1 %v5943_v17 }
 0x3e3   : > { %4365 = vmatprep.subr.bf16.mxu1 %v5953_v47 }
 0x3e6   : > { %4367 = vmatpush1.bf16.msra.mxu1 %v5951_v30 }
 0x3e7   : > { %4369 = vmatprep.subr.bf16.mxu1 %v5887_v23 }
 0x3e9   : > { %3172 = vmatmul.mubr.f32.vlgmr.msra.gmra.mrb[36].mxu1 %v4258_v48 }
 0x3ea   : > { %4371 = vmatpush1.bf16.msra.mxu1 %v5885_v22  ;;  %3288 = vmatprep.mubr.f32.mxu1 %v4853_v1 }
 0x3eb   : > { %4373 = vmatprep.subr.bf16.mxu1 %v5895_v34 }
 0x3ee   : > { %4375 = vmatpush1.bf16.msra.mxu1 %v5893_v8 }
 0x3ef   : > { %4377 = vmatprep.subr.bf16.mxu1 %v5905_v38 }
 0x3f2   : > { %4379 = vmatpush1.bf16.msra.mxu1 %v5903_v26 }
 0x3f3   : > { %4381 = vmatprep.subr.bf16.mxu1 %v5915_v42 }
 0x3f6   : > { %4383 = vmatpush1.bf16.msra.mxu1 %v5913_v9 }
 0x3f7   : > { %4385 = vmatprep.subr.bf16.mxu1 %v5925_v46 }
 0x3fa   : > { %4387 = vmatpush1.bf16.msra.mxu1 %v5923_v25 }
 0x3fb   : > { %4389 = vmatprep.subr.bf16.mxu1 %v5935_v50 }
 0x3fe   : > { %4391 = vmatpush1.bf16.msra.mxu1 %v5933_v3 }
 0x3ff   : > { %4393 = vmatprep.subr.bf16.mxu1 %v5945_v54 }
 0x402   : > { %4395 = vmatpush1.bf16.msra.mxu1 %v5943_v17 }
 0x403   : > { %4397 = vmatprep.subr.bf16.mxu1 %v5953_v47 }
 0x406   : > { %4399 = vmatpush1.bf16.msra.mxu1 %v5951_v30 }
 0x407   : > { %4401 = vmatprep.subr.bf16.mxu1 %v5887_v23 }
 0x409   : > { %3289 = vmatmul.mubr.f32.vlgmr.msra.gmra.mrb[38].mxu1 %v4260_v61  ;;  %v3860_v61 = vrot.slane %v4267_v58, %v4929_v5 }
 0x40a   : > { %4403 = vmatpush1.bf16.msra.mxu1 %v5885_v22  ;;  %3405 = vmatprep.mubr.f32.mxu1 %v4853_v1 }
 0x40b   : > { %4405 = vmatprep.subr.bf16.mxu1 %v5895_v34 }
 0x40e   : > { %4407 = vmatpush1.bf16.msra.mxu1 %v5893_v8 }
 0x40f   : > { %4409 = vmatprep.subr.bf16.mxu1 %v5905_v38 }
 0x412   : > { %4411 = vmatpush1.bf16.msra.mxu1 %v5903_v26 }
 0x413   : > { %4413 = vmatprep.subr.bf16.mxu1 %v5915_v42 }
 0x416   : > { %4415 = vmatpush1.bf16.msra.mxu1 %v5913_v9 }
 0x417   : > { %4417 = vmatprep.subr.bf16.mxu1 %v5925_v46 }
 0x41a   : > { %4419 = vmatpush1.bf16.msra.mxu1 %v5923_v25 }
 0x41b   : > { %4421 = vmatprep.subr.bf16.mxu1 %v5935_v50 }
 0x41e   : > { %4423 = vmatpush1.bf16.msra.mxu1 %v5933_v3 }
 0x41f   : > { %4425 = vmatprep.subr.bf16.mxu1 %v5945_v54 }
 0x422   : > { %4427 = vmatpush1.bf16.msra.mxu1 %v5943_v17 }
 0x423   : > { %4429 = vmatprep.subr.bf16.mxu1 %v5953_v47 }
 0x426   : > { %4431 = vmatpush1.bf16.msra.mxu1 %v5951_v30 }
 0x427   : > { %4433 = vmatprep.subr.bf16.mxu1 %v5887_v23 }
 0x429   : > { %3406 = vmatmul.mubr.f32.vlgmr.msra.gmra.mrb[40].mxu1 %v4261_v39  ;;  %v3864_v39 = vrot.slane %v4267_v58, %v4932_v6 }
 0x42a   : > { %4435 = vmatpush1.bf16.msra.mxu1 %v5885_v22  ;;  %3503 = vmatprep.mubr.f32.mxu1 %v4853_v1 }
 0x42b   : > { %4437 = vmatprep.subr.bf16.mxu1 %v5895_v34 }
 0x42e   : > { %4439 = vmatpush1.bf16.msra.mxu1 %v5893_v8 }
 0x42f   : > { %4441 = vmatprep.subr.bf16.mxu1 %v5905_v38 }
 0x432   : > { %4443 = vmatpush1.bf16.msra.mxu1 %v5903_v26 }
 0x433   : > { %4445 = vmatprep.subr.bf16.mxu1 %v5915_v42 }
 0x436   : > { %4447 = vmatpush1.bf16.msra.mxu1 %v5913_v9 }
 0x437   : > { %4449 = vmatprep.subr.bf16.mxu1 %v5925_v46 }
 0x43a   : > { %4451 = vmatpush1.bf16.msra.mxu1 %v5923_v25 }
 0x43b   : > { %4453 = vmatprep.subr.bf16.mxu1 %v5935_v50 }
 0x43e   : > { %4455 = vmatpush1.bf16.msra.mxu1 %v5933_v3 }
 0x43f   : > { %4457 = vmatprep.subr.bf16.mxu1 %v5945_v54 }
 0x442   : > { %4459 = vmatpush1.bf16.msra.mxu1 %v5943_v17 }
 0x443   : > { %4461 = vmatprep.subr.bf16.mxu1 %v5953_v47 }
 0x446   : > { %4463 = vmatpush1.bf16.msra.mxu1 %v5951_v30 }
 0x447   : > { %4465 = vmatprep.subr.bf16.mxu1 %v5887_v23 }
 0x449   : > { %3504 = vmatmul.mubr.f32.vlgmr.msra.gmra.mrb[42].mxu1 %v4262_v40  ;;  %v3865_v40 = vcombine.low %v3860_v61, %v3864_v39 }
 0x44a   : > { %4467 = vmatpush1.bf16.msra.mxu1 %v5885_v22  ;;  %3620 = vmatprep.mubr.f32.mxu1 %v4853_v1 }
 0x44b   : > { %4469 = vmatprep.subr.bf16.mxu1 %v5895_v34 }
 0x44e   : > { %4471 = vmatpush1.bf16.msra.mxu1 %v5893_v8 }
 0x44f   : > { %4473 = vmatprep.subr.bf16.mxu1 %v5905_v38 }
 0x452   : > { %4475 = vmatpush1.bf16.msra.mxu1 %v5903_v26 }
 0x453   : > { %4477 = vmatprep.subr.bf16.mxu1 %v5915_v42 }
 0x456   : > { %4479 = vmatpush1.bf16.msra.mxu1 %v5913_v9 }
 0x457   : > { %4481 = vmatprep.subr.bf16.mxu1 %v5925_v46 }
 0x45a   : > { %4483 = vmatpush1.bf16.msra.mxu1 %v5923_v25 }
 0x45b   : > { %4485 = vmatprep.subr.bf16.mxu1 %v5935_v50 }
 0x45e   : > { %4487 = vmatpush1.bf16.msra.mxu1 %v5933_v3 }
 0x45f   : > { %4489 = vmatprep.subr.bf16.mxu1 %v5945_v54 }
 0x462   : > { %4491 = vmatpush1.bf16.msra.mxu1 %v5943_v17 }
 0x463   : > { %4493 = vmatprep.subr.bf16.mxu1 %v5953_v47 }
 0x466   : > { %4495 = vmatpush1.bf16.msra.mxu1 %v5951_v30 }
 0x467   : > { %4497 = vmatprep.subr.bf16.mxu1 %v5887_v23 }
 0x469   : > { %3621 = vmatmul.mubr.f32.vlgmr.msra.gmra.mrb[44].mxu1 %v4264_v62 }
 0x46a   : > { %4499 = vmatpush1.bf16.msra.mxu1 %v5885_v22  ;;  %3737 = vmatprep.mubr.f32.mxu1 %v4853_v1 }
 0x46b   : > { %4501 = vmatprep.subr.bf16.mxu1 %v5895_v34 }
 0x46e   : > { %4503 = vmatpush1.bf16.msra.mxu1 %v5893_v8 }
 0x46f   : > { %4505 = vmatprep.subr.bf16.mxu1 %v5905_v38 }
 0x472   : > { %4507 = vmatpush1.bf16.msra.mxu1 %v5903_v26 }
 0x473   : > { %4509 = vmatprep.subr.bf16.mxu1 %v5915_v42 }
 0x476   : > { %4511 = vmatpush1.bf16.msra.mxu1 %v5913_v9 }
 0x477   : > { %4513 = vmatprep.subr.bf16.mxu1 %v5925_v46 }
 0x47a   : > { %4515 = vmatpush1.bf16.msra.mxu1 %v5923_v25 }
 0x47b   : > { %4517 = vmatprep.subr.bf16.mxu1 %v5935_v50 }
 0x47c   : > { %v2976_v31 = vpop.f32.mrb[32].mxu1 }
 0x47d   : > { %v2978_v63 = vpop.f32.mrb[33].mxu1 }
 0x47e   : > { %4519 = vmatpush1.bf16.msra.mxu1 %v5933_v3  ;;  %v2983_v0 = vcombine.low %v2976_v31, %v2978_v63 }
 0x47f   : > { %4521 = vmatprep.subr.bf16.mxu1 %v5945_v54 }
 0x480   : > { %2984 = vrot.lane.b32.xlu1 %v2983_v0, %s4854_s7 }
 0x482   : > { %4523 = vmatpush1.bf16.msra.mxu1 %v5943_v17 }
 0x483   : > { %4525 = vmatprep.subr.bf16.mxu1 %v5953_v47 }
 0x486   : > { %4527 = vmatpush1.bf16.msra.mxu1 %v5951_v30 }
 0x487   : > { %4529 = vmatprep.subr.bf16.mxu1 %v5887_v23 }
 0x489   : > { %3738 = vmatmul.mubr.f32.vlgmr.msra.gmra.mrb[46].mxu1 %v4265_v49 }
 0x48a   : > { %4531 = vmatpush1.bf16.msra.mxu1 %v5885_v22  ;;  %3835 = vmatprep.mubr.f32.mxu1 %v4853_v1 }
 0x48b   : > { %4533 = vmatprep.subr.bf16.mxu1 %v5895_v34 }
 0x48e   : > { %4535 = vmatpush1.bf16.msra.mxu1 %v5893_v8  ;;  %v4266_v8 = vld [vmem:[%s6257_s4 + $0x20] sm:$0xf] }
 0x48f   : > { %4537 = vmatprep.subr.bf16.mxu1 %v5905_v38 }
 0x492   : > { %4539 = vmatpush1.bf16.msra.mxu1 %v5903_v26 }
 0x493   : > { %4541 = vmatprep.subr.bf16.mxu1 %v5915_v42 }
 0x496   : > { %4543 = vmatpush1.bf16.msra.mxu1 %v5913_v9 }
 0x497   : > { %4545 = vmatprep.subr.bf16.mxu1 %v5925_v46 }
 0x49a   : > { %4547 = vmatpush1.bf16.msra.mxu1 %v5923_v25 }
 0x49b   : > { %4549 = vmatprep.subr.bf16.mxu1 %v5935_v50 }
 0x49c   : > { %v3075_v22 = vpop.f32.mrb[34].mxu1 }
 0x49d   : > { %v3077_v1 = vpop.f32.mrb[35].mxu1 }
 0x49e   : > { %4551 = vmatpush1.bf16.msra.mxu1 %v5933_v3  ;;  %v3082_v23 = vcombine.low %v3075_v22, %v3077_v1  ;;  %v3640_v22 = vld [vmem:[%s6254_s1] ss:$2 sm:$0x3] }
 0x49f   : > { %4553 = vmatprep.subr.bf16.mxu1 %v5945_v54 }
 0x4a0   : > { %3083 = vrot.lane.b32.xlu0 %v3082_v23, %s4854_s7  ;;  %v3645_v23 = vrot.slane %v3640_v22, %v4929_v5 }
 0x4a2   : > { %4555 = vmatpush1.bf16.msra.mxu1 %v5943_v17  ;;  %v3200_v17 = vrot.slane %v4259_v36, %v4932_v6 }
 0x4a3   : > { %4557 = vmatprep.subr.bf16.mxu1 %v5953_v47  ;;  %v3528_v47 = vrot.slane %v4263_v59, %v4929_v5 }
 0x4a4   : > { %v3201_v19 = vcombine.low %v3196_v53, %v3200_v17 }
 0x4a5   : > { %v3533_v48 = vcombine.low %v3528_v47, %v3532_v57 }
 0x4a6   : > { %4559 = vmatpush1.bf16.msra.mxu1 %v5951_v30  ;;  %v3318_v30 = vcombine.low %v3313_v56, %v3317_v28 }
 0x4a9   : > { %3836 = vmatmul.mubr.f32.vlgmr.msra.gmra.mrb[48].mxu1 %v4266_v8  ;;  %v3649_v8 = vrot.slane %v3640_v22, %v4932_v6 }
 0x4bc   : > { %v3173_v34 = vpop.f32.mrb[36].mxu1 }
 0x4bd   : > { %v3175_v26 = vpop.f32.mrb[37].mxu1 }
 0x4be   : > { %v3180_v38 = vcombine.low %v3173_v34, %v3175_v26 }
 0x4c0   : > { %3181 = vrot.lane.b32.xlu1 %v3180_v38, %s4854_s7  ;;  %v3650_v38 = vcombine.low %v3645_v23, %v3649_v8  ;;  %v2993_v23 = vld [vmem:[%s6254_s1] ss:$2 sm:$0x3] }
 0x4c1   : > { %v2998_v8 = vrot.slane %v2993_v23, %v4929_v5 }
 0x4dc   : > { %v3290_v9 = vpop.f32.mrb[38].mxu1 }
 0x4dd   : > { %v3292_v42 = vpop.f32.mrb[39].mxu1 }
 0x4de   : > { %v3297_v25 = vcombine.low %v3290_v9, %v3292_v42 }
 0x4e0   : > { %3298 = vrot.lane.b32.xlu0 %v3297_v25, %s4854_s7 }
 0x4f2   : > { %v2985_v46 = vpop.permute.xlu1 %2984 }
 0x4f3   : > { %v2986_v3 = vrot.slane %v2985_v46, 4 }
 0x4f5   : > { %v2987_v7 = vsel %vm260_vm3, %v2986_v3, %v2985_v46  ;;  %2991 = vst.msk [vmem:[#allocation2 + $0x8] sm:$0xf] %vm268_vm4, %v2986_v3 }
 0x4f6   : > { %2990 = vst.msk [vmem:[#allocation2] sm:$0xff] %vm4955_vm5, %v2987_v7 }
 0x4fc   : > { %v3407_v50 = vpop.f32.mrb[40].mxu1 }
 0x4fd   : > { %v3409_v33 = vpop.f32.mrb[41].mxu1  ;;  %v6129_v12 = vld [vmem:[#allocation2] sm:$0xff] }
 0x4fe   : > { %v3414_v41 = vcombine.low %v3407_v50, %v3409_v33 }
 0x500   : > { %3415 = vrot.lane.b32.xlu1 %v3414_v41, %s4854_s7 }
 0x512   : > { %v3084_v10 = vpop.permute.xlu0 %3083 }
 0x513   : > { %v3085_v11 = vrot.slane %v3084_v10, 4 }
 0x515   : > { %v3086_v13 = vsel %vm260_vm3, %v3085_v11, %v3084_v10  ;;  %3090 = vst.msk [vmem:[#allocation2 + $0x8] sm:$0xf] %vm268_vm4, %v3085_v11 }
 0x516   : > { %3089 = vst.msk [vmem:[#allocation2] sm:$0xff] %vm4955_vm5, %v3086_v13 }
 0x51c   : > { %v3505_v4 = vpop.f32.mrb[42].mxu1  ;;  %v3092_v35 = vld [vmem:[#allocation2 + $0x8] sm:$0xf] }
 0x51d   : > { %v3507_v51 = vpop.f32.mrb[43].mxu1  ;;  %v3091_v44 = vld [vmem:[#allocation2] sm:$0xff] }
 0x51e   : > { %v3512_v52 = vcombine.low %v3505_v4, %v3507_v51 }
 0x520   : > { %3513 = vrot.lane.b32.xlu0 %v3512_v52, %s4854_s7 }
 0x532   : > { %v3182_v24 = vpop.permute.xlu1 %3181 }
 0x533   : > { %v3183_v14 = vrot.slane %v3182_v24, 4 }
 0x535   : > { %v3184_v43 = vsel %vm260_vm3, %v3183_v14, %v3182_v24  ;;  %3188 = vst.msk [vmem:[#allocation2 + $0x8] sm:$0xf] %vm268_vm4, %v3183_v14 }
 0x536   : > { %3187 = vst.msk [vmem:[#allocation2] sm:$0xff] %vm4955_vm5, %v3184_v43 }
 0x53c   : > { %v3622_v16 = vpop.f32.mrb[44].mxu1  ;;  %v3190_v45 = vld [vmem:[#allocation2 + $0x8] sm:$0xf] }
 0x53d   : > { %v3624_v18 = vpop.f32.mrb[45].mxu1  ;;  %v3189_v27 = vld [vmem:[#allocation2] sm:$0xff] }
 0x53e   : > { %v3629_v54 = vcombine.low %v3622_v16, %v3624_v18 }
 0x540   : > { %3630 = vrot.lane.b32.xlu1 %v3629_v54, %s4854_s7 }
 0x544   : > { %3202 = vrot.lane.b32.xlu1 %v3201_v19, %s4856_s9 }
 0x552   : > { %v3299_v20 = vpop.permute.xlu0 %3298 }
 0x553   : > { %v3300_v21 = vrot.slane %v3299_v20, 4 }
 0x555   : > { %v3301_v37 = vsel %vm260_vm3, %v3300_v21, %v3299_v20  ;;  %3305 = vst.msk [vmem:[#allocation2 + $0x8] sm:$0xf] %vm268_vm4, %v3300_v21  ;;  %v3886_v21 = vld [vmem:[%s6258_s5] sm:$0xf] }
 0x556   : > { %3304 = vst.msk [vmem:[#allocation2] sm:$0xff] %vm4955_vm5, %v3301_v37 }
 0x55c   : > { %v3739_v55 = vpop.f32.mrb[46].mxu1  ;;  %v3307_v63 = vld [vmem:[#allocation2 + $0x8] sm:$0xf] }
 0x55d   : > { %v3741_v32 = vpop.f32.mrb[47].mxu1  ;;  %v3306_v49 = vld [vmem:[#allocation2] sm:$0xff] }
 0x55e   : > { %v3746_v60 = vcombine.low %v3739_v55, %v3741_v32 }
 0x560   : > { %3747 = vrot.lane.b32.xlu0 %v3746_v60, %s4854_s7 }
 0x564   : > { %3319 = vrot.lane.b32.xlu0 %v3318_v30, %s4855_s8 }
 0x568   : > { %3534 = vrot.lane.b32.xlu0 %v3533_v48, %s4860_s13 }
 0x56c   : > { %3866 = vrot.lane.b32.xlu0 %v3865_v40, %s4864_s19 }
 0x570   : > { %3097 = vrot.lane.b32.xlu0 %v3092_v35, %s4865_s24 }
 0x572   : > { %v3416_v62 = vpop.permute.xlu1 %3415 }
 0x573   : > { %v3417_v31 = vrot.slane %v3416_v62, 4 }
 0x575   : > { %v3418_v0 = vsel %vm260_vm3, %v3417_v31, %v3416_v62  ;;  %3422 = vst.msk [vmem:[#allocation2 + $0x8] sm:$0xf] %vm268_vm4, %v3417_v31 }
 0x576   : > { %3421 = vst.msk [vmem:[#allocation2] sm:$0xff] %vm4955_vm5, %v3418_v0 }
 0x57c   : > { %v3837_v1 = vpop.f32.mrb[48].mxu1  ;;  %v3424_v25 = vld [vmem:[#allocation2 + $0x8] sm:$0xf] }
 0x57d   : > { %v3839_v34 = vpop.f32.mrb[49].mxu1  ;;  %v3423_v3 = vld [vmem:[#allocation2] sm:$0xff] }
 0x57e   : > { %v3844_v26 = vcombine.low %v3837_v1, %v3839_v34  ;;  %v3002_v34 = vrot.slane %v2993_v23, %v4932_v6 }
 0x580   : > { %3845 = vrot.lane.b32.xlu1 %v3844_v26, %s4854_s7 }
 0x584   : > { %3651 = vrot.lane.b32.xlu1 %v3650_v38, %s4861_s14  ;;  %s6270_s14 = sshll.u32 %s6272_s22, 3 }
 0x585   : > { %s251_s19 = scalar_lea.vmem %s6259_s6, %s6270_s14 }
 0x588   : > { %3095 = vrot.lane.b32.xlu1 %v3091_v44, %s4865_s24 }
 0x592   : > { %v3514_v9 = vpop.permute.xlu0 %3513 }
 0x593   : > { %v3515_v42 = vrot.slane %v3514_v9, 4 }
 0x595   : > { %v3516_v46 = vsel %vm260_vm3, %v3515_v42, %v3514_v9  ;;  %3520 = vst.msk [vmem:[#allocation2 + $0x8] sm:$0xf] %vm268_vm4, %v3515_v42 }
 0x596   : > { %3519 = vst.msk [vmem:[#allocation2] sm:$0xff] %vm4955_vm5, %v3516_v46 }
 0x59c   : > { %v3522_v33 = vld [vmem:[#allocation2 + $0x8] sm:$0xf] }
 0x59d   : > { %v3521_v10 = vld [vmem:[#allocation2] sm:$0xff] }
 0x5b2   : > { %v3631_v7 = vpop.permute.xlu1 %3630 }
 0x5b3   : > { %v3632_v50 = vrot.slane %v3631_v7, 4 }
 0x5b5   : > { %v3633_v41 = vsel %vm260_vm3, %v3632_v50, %v3631_v7  ;;  %3637 = vst.msk [vmem:[#allocation2 + $0x8] sm:$0xf] %vm268_vm4, %v3632_v50 }
 0x5b6   : > { %v3203_v11 = vpop.permute.xlu1 %3202  ;;  %3636 = vst.msk [vmem:[#allocation2] sm:$0xff] %vm4955_vm5, %v3633_v41 }
 0x5b7   : > { %v3204_v13 = vrot.slane %v3203_v11, 4 }
 0x5b9   : > { %v3205_v4 = vsel %vm794_vm7, %v3204_v13, %v3203_v11  ;;  %v3209_v51 = vmul.f32 %v3204_v13, %v3190_v45 }
 0x5ba   : > { %v3208_v52 = vmul.f32 %v3205_v4, %v3189_v27 }
 0x5bb   : > { %3214 = vrot.lane.b32.xlu0 %v3209_v51, %s4857_s10 }
 0x5bc   : > { %3212 = vrot.lane.b32.xlu1 %v3208_v52, %s4857_s10  ;;  %v3639_v35 = vld [vmem:[#allocation2 + $0x8] sm:$0xf] }
 0x5bd   : > { %v3638_v44 = vld [vmem:[#allocation2] sm:$0xff] }
 0x5d2   : > { %v3748_v24 = vpop.permute.xlu0 %3747 }
 0x5d3   : > { %v3749_v14 = vrot.slane %v3748_v24, 4 }
 0x5d5   : > { %v3750_v43 = vsel %vm260_vm3, %v3749_v14, %v3748_v24  ;;  %3754 = vst.msk [vmem:[#allocation2 + $0x8] sm:$0xf] %vm268_vm4, %v3749_v14 }
 0x5d6   : > { %v3320_v36 = vpop.permute.xlu0 %3319  ;;  %3753 = vst.msk [vmem:[#allocation2] sm:$0xff] %vm4955_vm5, %v3750_v43 }
 0x5d7   : > { %v3321_v16 = vrot.slane %v3320_v36, 4 }
 0x5d9   : > { %v3322_v53 = vsel %vm1079_vm6, %v3321_v16, %v3320_v36  ;;  %v3326_v17 = vmul.f32 %v3321_v16, %v3307_v63 }
 0x5da   : > { %v3325_v18 = vmul.f32 %v3322_v53, %v3306_v49  ;;  %v3535_v54 = vpop.permute.xlu0 %3534 }
 0x5db   : > { %3331 = vrot.lane.b32.xlu0 %v3326_v17, %s4858_s11  ;;  %v3536_v19 = vrot.slane %v3535_v54, 4 }
 0x5dc   : > { %3329 = vrot.lane.b32.xlu1 %v3325_v18, %s4858_s11  ;;  %v3756_v55 = vld [vmem:[#allocation2 + $0x8] sm:$0xf]  ;;  %s6267_s11 = smov 94   ;;  %v4869_v18 = vmov 839922192  }
 0x5dd   : > { %v3541_v20 = vmul.f32 %v3536_v19, %v3522_v33  ;;  %v3537_v45 = vsel %vm1640_vm12, %v3536_v19, %v3535_v54  ;;  %v3755_v28 = vld [vmem:[#allocation2] sm:$0xff]  ;;  %v3892_v54 = vunpack.c.l.s4 %v4869_v18 }
 0x5de   : > { %v3540_v37 = vmul.f32 %v3537_v45, %v3521_v10  ;;  %v3867_v60 = vpop.permute.xlu0 %3866 }
 0x5df   : > { %3429 = vrot.lane.b32.xlu0 %v3424_v25, %s4859_s12  ;;  %v3868_v57 = vrot.slane %v3867_v60, 4 }
 0x5e0   : > { %3427 = vrot.lane.b32.xlu1 %v3423_v3, %s4859_s12  ;;  %v3003_v3 = vcombine.low %v2998_v8, %v3002_v34 }
 0x5e1   : > { %v3869_v48 = vsel %vm2486_vm1, %v3868_v57, %v3867_v60 }
 0x5e2   : > { %v3098_v31 = vpop.permute.xlu0 %3097  ;;  %v3005_v6 = vmul.f32 %v3003_v3, %v6129_v12 }
 0x5e3   : > { %3546 = vrot.lane.b32.xlu0 %v3541_v20, %s4862_s25  ;;  %v3100_v42 = vrot.slane %v3098_v31, 4 }
 0x5e4   : > { %3889 = vperm.xlu1 %4842, %v3886_v21  }
 0x5e8   : > { %3544 = vrot.lane.b32.xlu1 %v3540_v37, %s4862_s25 }
 0x5f2   : > { %v3846_v27 = vpop.permute.xlu1 %3845 }
 0x5f3   : > { %v3847_v29 = vrot.slane %v3846_v27, 4 }
 0x5f5   : > { %v3848_v56 = vsel %vm260_vm3, %v3847_v29, %v3846_v27  ;;  %3852 = vst.msk [vmem:[#allocation2 + $0x8] sm:$0xf] %vm268_vm4, %v3847_v29  ;;  %vm6268_vm3 = vcmask 900096   ;;  %vm6269_vm4 = vcmask 785408  }
 0x5f6   : > { %v3652_v32 = vpop.permute.xlu1 %3651  ;;  %3851 = vst.msk [vmem:[#allocation2] sm:$0xff] %vm4955_vm5, %v3848_v56 }
 0x5f7   : > { %v3653_v59 = vrot.slane %v3652_v32, 4 }
 0x5f9   : > { %v3654_v30 = vsel %vm1925_vm14, %v3653_v59, %v3652_v32  ;;  %v3658_v47 = vmul.f32 %v3653_v59, %v3639_v35 }
 0x5fa   : > { %v3657_v58 = vmul.f32 %v3654_v30, %v3638_v44  ;;  %v3096_v62 = vpop.permute.xlu1 %3095 }
 0x5fb   : > { %3663 = vrot.lane.b32.xlu0 %v3658_v47, %s4863_s16  ;;  %v3099_v26 = vrot.slane %v3096_v62, 4 }
 0x5fc   : > { %3661 = vrot.lane.b32.xlu1 %v3657_v58, %s4863_s16  ;;  %v3854_v39 = vld [vmem:[#allocation2 + $0x8] sm:$0xf] }
 0x5fd   : > { %v3853_v61 = vld [vmem:[#allocation2] sm:$0xff]  ;;  %v3873_v40 = vmul.f32 %v3868_v57, %v3854_v39  ;;  %v3101_v7 = vsel %vm379_vm9, %v3099_v26, %v3100_v42 }
 0x5fe   : > { %v3872_v15 = vmul.f32 %v3869_v48, %v3853_v61  ;;  %v3102_v5 = vsel %vm327_vm2, %v3096_v62, %v3101_v7 }
 0x5ff   : > { %3759 = vrot.lane.b32.xlu0 %v3755_v28, %s4866_s29  ;;  %v3104_v14 = vadd.f32 %v3102_v5, %v3005_v6  ;;  %v3893_v28 = vunpack.c.0.s8 %v3892_v54 }
 0x600   : > { %3761 = vrot.lane.b32.xlu1 %v3756_v55, %s4866_s29 }
 0x601   : > { %v3896_v61 = vsub.s32 %v3893_v28, %v4918_v2 }
 0x603   : > { %3876 = vrot.lane.b32.xlu0 %v3872_v15, %s6267_s11 }
 0x604   : > { %3878 = vrot.lane.b32.xlu1 %v3873_v40, %s6267_s11 }
 0x62d   : > { %v3215_v0 = vpop.permute.xlu0 %3214 }
 0x62e   : > { %v3213_v63 = vpop.permute.xlu1 %3212  ;;  %v3217_v25 = vrot.slane %v3215_v0, 4 }
 0x62f   : > { %v3216_v46 = vrot.slane %v3213_v63, 4 }
 0x631   : > { %v3218_v10 = vsel %vm379_vm9, %v3216_v46, %v3217_v25 }
 0x632   : > { %v3219_v24 = vsel %vm809_vm8, %v3213_v63, %v3218_v10 }
 0x633   : > { %v3221_v17 = vadd.f32 %v3219_v24, %v3104_v14 }
 0x64d   : > { %v3332_v22 = vpop.permute.xlu0 %3331 }
 0x64e   : > { %v3330_v49 = vpop.permute.xlu1 %3329  ;;  %v3334_v50 = vrot.slane %v3332_v22, 4  ;;  %v4844_v22 = vld [vmem:[%s4939_s30] sm:$0xff] }
 0x64f   : > { %v3333_v33 = vrot.slane %v3330_v49, 4 }
 0x651   : > { %v3430_v38 = vpop.permute.xlu0 %3429  ;;  %v3335_v51 = vsel %vm379_vm9, %v3333_v33, %v3334_v50 }
 0x652   : > { %v3428_v1 = vpop.permute.xlu1 %3427  ;;  %v3432_v11 = vrot.slane %v3430_v38, 4  ;;  %v3336_v36 = vsel %vm1094_vm11, %v3330_v49, %v3335_v51 }
 0x653   : > { %v3431_v13 = vrot.slane %v3428_v1, 4  ;;  %v3338_v21 = vadd.f32 %v3336_v36, %v3221_v17 }
 0x655   : > { %v3547_v4 = vpop.permute.xlu0 %3546  ;;  %v3433_v35 = vsel %vm379_vm9, %v3431_v13, %v3432_v11 }
 0x656   : > { %v3549_v43 = vrot.slane %v3547_v4, 4  ;;  %v3434_v20 = vsel %vm1370_vm13, %v3428_v1, %v3433_v35 }
 0x657   : > { %v3436_v56 = vadd.f32 %v3434_v20, %v3338_v21 }
 0x663   : > { %v3890_v9 = vpop.permute.xlu1 %3889 }
 0x664   : > { %v3897_v63 = vrot.slane %v3890_v9, %v3896_v61 }
 0x667   : > { %v3545_v41 = vpop.permute.xlu1 %3544 }
 0x668   : > { %v3548_v52 = vrot.slane %v3545_v41, 4 }
 0x66a   : > { %v3550_v19 = vsel %vm379_vm9, %v3548_v52, %v3549_v43 }
 0x66b   : > { %v3551_v27 = vsel %vm6268_vm3, %v3545_v41, %v3550_v19 }
 0x66c   : > { %v3553_v60 = vadd.f32 %v3551_v27, %v3436_v56 }
 0x66d   : > { %v3664_v44 = vpop.permute.xlu0 %3663 }
 0x66e   : > { %v3666_v16 = vrot.slane %v3664_v44, 4  ;;  %v3662_v53 = vpop.permute.xlu1 %3661 }
 0x66f   : > { %v3665_v12 = vrot.slane %v3662_v53, 4 }
 0x671   : > { %v3667_v45 = vsel %vm379_vm9, %v3665_v12, %v3666_v16  ;;  %v3760_v37 = vpop.permute.xlu0 %3759 }
 0x672   : > { %v3763_v29 = vrot.slane %v3760_v37, 4  ;;  %v3762_v55 = vpop.permute.xlu1 %3761  ;;  %v3668_v59 = vsel %vm6269_vm4, %v3662_v53, %v3667_v45 }
 0x673   : > { %v3764_v32 = vrot.slane %v3762_v55, 4  ;;  %v3670_v39 = vadd.f32 %v3668_v59, %v3553_v60 }
 0x675   : > { %v3765_v30 = vsel %vm379_vm9, %v3763_v29, %v3764_v32  ;;  %v3877_v47 = vpop.permute.xlu0 %3876 }
 0x676   : > { %v3766_v57 = vsel %vm2216_vm15, %v3760_v37, %v3765_v30  ;;  %v3880_v58 = vrot.slane %v3877_v47, 4  ;;  %v3879_v48 = vpop.permute.xlu1 %3878 }
 0x677   : > { %v3881_v15 = vrot.slane %v3879_v48, 4  ;;  %v3768_v40 = vadd.f32 %v3766_v57, %v3670_v39 }
 0x679   : > { %v3882_v62 = vsel %vm379_vm9, %v3880_v58, %v3881_v15 }
 0x67a   : > { %v3883_v31 = vsel %vm2501_vm0, %v3877_v47, %v3882_v62 }
 0x67b   : > { %v3885_v0 = vadd.f32 %v3883_v31, %v3768_v40 }
 0x67d   : > { %v3899_v49 = vadd.f32 %v3897_v63, %v3885_v0 }
 0x67f   : > { %v3900_v1 = vadd.f32 %v4844_v22, %v3899_v49 }
 0x681   : > { %3901 = vst [vmem:[%s251_s19] sm:$0xff] %v3900_v1 }
 0x682 PF: > { %s16_s21 = sadd.s32 1, %s4851_s21  }
 0x683   : > { %p13_p4 = scmp.ge.s32.totalorder %s16_s21, 4  }
 0x685   :  { %15 = sbr.rel (!%p13_p4) target bundleno = 1 (0x1), region = 91 }

</bundles_post_ra>
